<compile_context>
chip_gen: v7x
topology: tpu7x:2x2x1
jax: 0.10.0
libtpu: 0.0.40
codegen_flags: <defaults>
</compile_context>

<pallas_src>
import jax
import jax.numpy as jnp
from jax.experimental import pallas as pl
from jax.experimental.pallas import tpu as pltpu

# ----------------------------- synthetic config -----------------------------
B = 2               # batch
S = 8               # sequence length
BS = B * S          # rows per block (batch folded into the block)
H = 128             # hidden size (lane aligned)
NH = 4              # attention heads
HD = H // NH        # head dim
FF = 256            # FFN intermediate size
LAYERS = 2          # transformer blocks (DistilBERT has 6; small synthetic cfg)
VOCAB = 64          # synthetic vocab
NUM_LABELS = 12     # synthetic number of course labels
LABEL_PAD = 128     # lane-dense classifier output width (sliced to NUM_LABELS)
EPS = 1e-12         # DistilBERT LayerNorm eps


# ------------------------------ kernel helpers ------------------------------
def _layernorm(x, g, b):
    # statistics kept in f32
    mu = jnp.mean(x, axis=-1, keepdims=True)
    var = jnp.mean(jnp.square(x - mu), axis=-1, keepdims=True)
    return (x - mu) * jax.lax.rsqrt(var + EPS) * g + b


def _erf(x):
    # Abramowitz & Stegun 7.1.26 rational approximation (max err ~1.5e-7).
    # Uses only exp / mul / add / where — all guaranteed to lower on Mosaic.
    sgn = jnp.where(x >= 0.0, 1.0, -1.0)
    a = jnp.abs(x)
    t = 1.0 / (1.0 + 0.3275911 * a)
    poly = ((((1.061405429 * t - 1.453152027) * t + 1.421413741) * t
             - 0.284496736) * t + 0.254829592) * t
    return sgn * (1.0 - poly * jnp.exp(-a * a))


def _gelu_exact(x):
    # HF DistilBERT uses exact erf-GELU.
    return 0.5 * x * (1.0 + _erf(x * 0.7071067811865476))


# --------------------------------- kernel -----------------------------------
def bert_kernel(emb_ref, bias_ref, embg_ref, embb_ref,
                wqkv_ref, bqkv_ref, wo_ref, bo_ref, ln1g_ref, ln1b_ref,
                w1_ref, b1_ref, w2_ref, b2_ref, ln2g_ref, ln2b_ref,
                wc_ref, bc_ref, logits_ref, h_ref):
    """One encoder layer per grid step; all B*S rows processed per step.

    grid = (LAYERS,); h_ref is the VMEM-resident hidden-state carry [BS, H].
    """
    lyr = pl.program_id(0)

    # ---- layer 0: DistilBERT embeddings = LayerNorm(word_emb + pos_emb) ----
    @pl.when(lyr == 0)
    def _():
        h_ref[...] = _layernorm(emb_ref[...], embg_ref[...], embb_ref[...])

    x = h_ref[...]                                 # [BS, H] f32 (carried)
    xb = x.astype(jnp.bfloat16)

    # ---- fused QKV projection: one [H, 3H] MXU pass (scale folded into Wq) --
    qkv = jnp.dot(xb, wqkv_ref[...],
                  preferred_element_type=jnp.float32) + bqkv_ref[...]   # [BS, 3H]
    q = qkv[:, :H].astype(jnp.bfloat16)            # [BS, H] (3 casts total)
    k = qkv[:, H:2 * H].astype(jnp.bfloat16)
    v = qkv[:, 2 * H:].astype(jnp.bfloat16)

    # ---- attention scores for all heads, stacked along sublanes ------------
    # s_all[hi*BS:(hi+1)*BS, :] = q_hi @ k_hi^T  ->  [NH*BS, BS]
    s_all = jnp.concatenate(
        [jax.lax.dot_general(q[:, hi * HD:(hi + 1) * HD],
                             k[:, hi * HD:(hi + 1) * HD],
                             (((1,), (1,)), ((), ())),
                             preferred_element_type=jnp.float32)
         for hi in range(NH)], axis=0)
    # additive bias: -1e9 on cross-batch or masked keys (pre-tiled over heads)
    s_all = s_all + bias_ref[...]

    # ---- ONE softmax for all heads (1 max / 1 exp / 1 sum / 1 reciprocal) --
    s_all = s_all - jnp.max(s_all, axis=-1, keepdims=True)
    p_all = jnp.exp(s_all)
    p_all = p_all * pl.reciprocal(jnp.sum(p_all, axis=-1, keepdims=True),
                                  approx=True)
    p_all = p_all.astype(jnp.bfloat16)

    # ---- per-head context + accumulated output projection -------------------
    # wo row-slices keep every matmul output 128 lanes wide (no lane concat).
    attn = jnp.zeros((BS, H), jnp.float32)
    for hi in range(NH):                            # static per-head loop
        lo = hi * HD
        ctx = jnp.dot(p_all[hi * BS:(hi + 1) * BS, :], v[:, lo:lo + HD],
                      preferred_element_type=jnp.float32)               # [BS, HD]
        attn = attn + jnp.dot(ctx.astype(jnp.bfloat16), wo_ref[lo:lo + HD, :],
                              preferred_element_type=jnp.float32)       # [BS, H]
    attn = attn + bo_ref[...]

    # ---- post-attention LayerNorm (residual) --------------------------------
    x1 = _layernorm(x + attn, ln1g_ref[...], ln1b_ref[...])

    # ---- FFN: H -> FF -> H with exact erf-GELU ------------------------------
    ff = jnp.dot(x1.astype(jnp.bfloat16), w1_ref[...],
                 preferred_element_type=jnp.float32) + b1_ref[...]      # [BS, FF]
    ff = _gelu_exact(ff)
    ffo = jnp.dot(ff.astype(jnp.bfloat16), w2_ref[...],
                  preferred_element_type=jnp.float32) + b2_ref[...]     # [BS, H]

    h_new = _layernorm(x1 + ffo, ln2g_ref[...], ln2b_ref[...])
    h_ref[...] = h_new                                                  # carry

    # ---- final layer: [CLS] pooling + classifier (dropout = identity) -------
    # Safe: the output index_map is constant over the layer axis, so HBM
    # writeback only happens after the final grid step.
    @pl.when(lyr == LAYERS - 1)
    def _():
        cls = jnp.concatenate([h_new[b * S:b * S + 1, :] for b in range(B)],
                              axis=0)                                   # [B, H]
        logits_ref[...] = (jnp.dot(cls.astype(jnp.bfloat16), wc_ref[...],
                                   preferred_element_type=jnp.float32)
                           + bc_ref[...])


# -------------------------------- wrapper ------------------------------------
@jax.jit
def multilabel_bert_forward(params, input_ids, attention_mask):
    # Embedding gather (plain JAX glue); embedding LayerNorm runs in-kernel.
    positions = jnp.arange(S, dtype=jnp.int32)
    emb = params['word_emb'][input_ids] + params['pos_emb'][positions][None, :, :]
    emb = emb.reshape(BS, H)

    # Block-diagonal additive attention bias so folding the batch into one
    # [BS, H] block never mixes batch elements; key-side padding mask folded
    # in; pre-tiled over heads -> [NH*BS, BS] (zero in-kernel bias work).
    bidx = jnp.arange(BS, dtype=jnp.int32) // S
    same_batch = bidx[:, None] == bidx[None, :]
    key_ok = attention_mask.reshape(BS).astype(bool)[None, :]
    bias = jnp.where(same_batch & key_ok, 0.0, -1e9).astype(jnp.float32)
    bias = jnp.tile(bias, (NH, 1))                                      # [NH*BS, BS]

    per_layer = lambda blk: pl.BlockSpec(blk, lambda l: (l, 0, 0))
    shared2d = lambda blk: pl.BlockSpec(blk, lambda l: (0, 0))

    in_specs = [
        shared2d((BS, H)),              # emb
        shared2d((NH * BS, BS)),        # attention bias (block-diag + key mask)
        shared2d((1, H)),               # emb_ln_g
        shared2d((1, H)),               # emb_ln_b
        per_layer((None, H, 3 * H)),    # wqkv (bf16, Q cols pre-scaled)
        per_layer((None, 1, 3 * H)),    # bqkv
        per_layer((None, H, H)),        # wo   (bf16)
        per_layer((None, 1, H)),        # bo
        per_layer((None, 1, H)),        # ln1_g
        per_layer((None, 1, H)),        # ln1_b
        per_layer((None, H, FF)),       # w1   (bf16)
        per_layer((None, 1, FF)),       # b1
        per_layer((None, FF, H)),       # w2   (bf16)
        per_layer((None, 1, H)),        # b2
        per_layer((None, 1, H)),        # ln2_g
        per_layer((None, 1, H)),        # ln2_b
        shared2d((H, LABEL_PAD)),       # wc (padded, bf16)
        shared2d((1, LABEL_PAD)),       # bc (padded)
    ]
    out_spec = pl.BlockSpec((B, LABEL_PAD), lambda l: (0, 0))

    logits_padded = pl.pallas_call(
        bert_kernel,
        out_shape=jax.ShapeDtypeStruct((B, LABEL_PAD), jnp.float32),
        grid=(LAYERS,),
        in_specs=in_specs,
        out_specs=out_spec,
        scratch_shapes=[pltpu.VMEM((BS, H), jnp.float32)],   # hidden-state carry
        compiler_params=pltpu.CompilerParams(
            dimension_semantics=("arbitrary",)),
    )(emb, bias,
      params['emb_ln_g'], params['emb_ln_b'],
      params['wqkv'], params['bqkv'], params['wo'], params['bo'],
      params['ln1_g'], params['ln1_b'],
      params['w1'], params['b1'], params['w2'], params['b2'],
      params['ln2_g'], params['ln2_b'],
      params['wc_pad'], params['bc_pad'])

    # lane-dense kernel output -> slice back to the real label count
    return logits_padded[:, :NUM_LABELS]


# --------------------------- deterministic params ----------------------------
def init_params(key):
    def dense(k, shape, scale=0.02):
        return scale * jax.random.normal(k, shape, jnp.float32)

    keys = jax.random.split(key, 8)
    attn_scale = 1.0 / (HD ** 0.5)

    # fold 1/sqrt(HD) into the Q columns of wqkv / bqkv (one-time transform)
    wqkv = dense(keys[2], (LAYERS, H, 3 * H)).at[:, :, :H].multiply(attn_scale)
    bqkv = jnp.zeros((LAYERS, 1, 3 * H), jnp.float32).at[:, :, :H].multiply(attn_scale)

    params = {
        'word_emb': dense(keys[0], (VOCAB, H)),
        'pos_emb': dense(keys[1], (S, H)),
        'emb_ln_g': jnp.ones((1, H), jnp.float32),
        'emb_ln_b': jnp.zeros((1, H), jnp.float32),
        # per-layer weights stacked along a leading LAYERS axis (bf16 matmul
        # operands; biases / LayerNorm params stay f32)
        'wqkv': wqkv.astype(jnp.bfloat16),
        'bqkv': bqkv,
        'wo': dense(keys[3], (LAYERS, H, H)).astype(jnp.bfloat16),
        'bo': jnp.zeros((LAYERS, 1, H), jnp.float32),
        'ln1_g': jnp.ones((LAYERS, 1, H), jnp.float32),
        'ln1_b': jnp.zeros((LAYERS, 1, H), jnp.float32),
        'w1': dense(keys[4], (LAYERS, H, FF)).astype(jnp.bfloat16),
        'b1': jnp.zeros((LAYERS, 1, FF), jnp.float32),
        'w2': dense(keys[5], (LAYERS, FF, H)).astype(jnp.bfloat16),
        'b2': jnp.zeros((LAYERS, 1, H), jnp.float32),
        'ln2_g': jnp.ones((LAYERS, 1, H), jnp.float32),
        'ln2_b': jnp.zeros((LAYERS, 1, H), jnp.float32),
    }
    # classifier padded to 128 output lanes (zero columns beyond NUM_LABELS)
    wc = dense(keys[6], (H, NUM_LABELS))
    params['wc_pad'] = (jnp.zeros((H, LABEL_PAD), jnp.bfloat16)
                        .at[:, :NUM_LABELS].set(wc.astype(jnp.bfloat16)))
    params['bc_pad'] = jnp.zeros((1, LABEL_PAD), jnp.float32)
    return params


# ----------------------- pure-JAX reference (f32) ----------------------------
def reference_forward(params, input_ids, attention_mask):
    f32 = lambda a: a.astype(jnp.float32)
    x = params['word_emb'][input_ids] + params['pos_emb'][None, :, :]   # [B,S,H]
    x = _layernorm(x, params['emb_ln_g'], params['emb_ln_b'])
    bias = (1.0 - attention_mask.astype(jnp.float32))[:, None, None, :] * (-1e9)
    for l in range(LAYERS):
        qkv = x @ f32(params['wqkv'][l]) + params['bqkv'][l]
        q = qkv[..., :H].reshape(B, S, NH, HD).transpose(0, 2, 1, 3)
        k = qkv[..., H:2 * H].reshape(B, S, NH, HD).transpose(0, 2, 1, 3)
        v = qkv[..., 2 * H:].reshape(B, S, NH, HD).transpose(0, 2, 1, 3)
        s = jnp.einsum('bnqd,bnkd->bnqk', q, k) + bias   # scale folded in wqkv
        p = jax.nn.softmax(s, axis=-1)
        ctx = jnp.einsum('bnqk,bnkd->bnqd', p, v).transpose(0, 2, 1, 3).reshape(B, S, H)
        attn = ctx @ f32(params['wo'][l]) + params['bo'][l]
        x = _layernorm(x + attn, params['ln1_g'][l], params['ln1_b'][l])
        ff = x @ f32(params['w1'][l]) + params['b1'][l]
        ff = 0.5 * ff * (1.0 + jax.lax.erf(ff * 0.7071067811865476))
        ffo = ff @ f32(params['w2'][l]) + params['b2'][l]
        x = _layernorm(x + ffo, params['ln2_g'][l], params['ln2_b'][l])
    cls = x[:, 0, :]
    return cls @ f32(params['wc_pad']) + params['bc_pad']


if __name__ == "__main__":
    key = jax.random.PRNGKey(0)
    pkey, idkey = jax.random.split(key)
    params = init_params(pkey)

    input_ids = jax.random.randint(idkey, (B, S), 0, VOCAB, dtype=jnp.int32)
    attention_mask = jnp.ones((B, S), jnp.int32).at[1, 6:].set(0)  # pad tail row 1

    logits = multilabel_bert_forward(params, input_ids, attention_mask)
    jax.block_until_ready(logits)

    # tolerance-asserted pure-JAX reference (bf16 matmul operands + approx
    # reciprocal give small, expected deviations from f32)
    ref = reference_forward(params, input_ids, attention_mask)[:, :NUM_LABELS]
    max_diff = float(jnp.max(jnp.abs(logits - ref)))

    assert logits.shape == (B, NUM_LABELS), logits.shape
    assert bool(jnp.all(jnp.isfinite(logits)))
    assert max_diff < 5e-2, f"kernel/reference mismatch: {max_diff}"
    print("KERNEL_OK")
</pallas_src>

<mosaic_0001>
module attributes {stable_mosaic.version = 11 : i64} {
  func.func @bert_kernel(%arg0: i32, %arg1: memref<16x128xf32, #tpu.memory_space<vmem>>, %arg2: memref<64x16xf32, #tpu.memory_space<vmem>>, %arg3: memref<1x128xf32, #tpu.memory_space<vmem>>, %arg4: memref<1x128xf32, #tpu.memory_space<vmem>>, %arg5: memref<1x128x384xbf16, #tpu.memory_space<vmem>>, %arg6: memref<1x1x384xf32, #tpu.memory_space<vmem>>, %arg7: memref<1x128x128xbf16, #tpu.memory_space<vmem>>, %arg8: memref<1x1x128xf32, #tpu.memory_space<vmem>>, %arg9: memref<1x1x128xf32, #tpu.memory_space<vmem>>, %arg10: memref<1x1x128xf32, #tpu.memory_space<vmem>>, %arg11: memref<1x128x256xbf16, #tpu.memory_space<vmem>>, %arg12: memref<1x1x256xf32, #tpu.memory_space<vmem>>, %arg13: memref<1x256x128xbf16, #tpu.memory_space<vmem>>, %arg14: memref<1x1x128xf32, #tpu.memory_space<vmem>>, %arg15: memref<1x1x128xf32, #tpu.memory_space<vmem>>, %arg16: memref<1x1x128xf32, #tpu.memory_space<vmem>>, %arg17: memref<128x128xbf16, #tpu.memory_space<vmem>>, %arg18: memref<1x128xf32, #tpu.memory_space<vmem>>, %arg19: memref<2x128xf32, #tpu.memory_space<vmem>>, %arg20: memref<16x128xf32, #tpu.memory_space<vmem>>) attributes {dimension_semantics = [#tpu.dimension_semantics<arbitrary>], iteration_bounds = array<i64: 2>, scalar_prefetch = 0 : i64, scratch_operands = 1 : i64, tpu.core_type = #tpu.core_type<tc>, window_params = [{pipeline_mode = #tpu.pipeline_mode<synchronous>, transform_indices = @transform_0, window_bounds = array<i64: 16, 128>}, {pipeline_mode = #tpu.pipeline_mode<synchronous>, transform_indices = @transform_1, window_bounds = array<i64: 64, 16>}, {pipeline_mode = #tpu.pipeline_mode<synchronous>, transform_indices = @transform_2, window_bounds = array<i64: 1, 128>}, {pipeline_mode = #tpu.pipeline_mode<synchronous>, transform_indices = @transform_3, window_bounds = array<i64: 1, 128>}, {transform_indices = @transform_4, window_bounds = array<i64: 1, 128, 384>}, {transform_indices = @transform_5, window_bounds = array<i64: 1, 1, 384>}, {transform_indices = @transform_6, window_bounds = array<i64: 1, 128, 128>}, {transform_indices = @transform_7, window_bounds = array<i64: 1, 1, 128>}, {transform_indices = @transform_8, window_bounds = array<i64: 1, 1, 128>}, {transform_indices = @transform_9, window_bounds = array<i64: 1, 1, 128>}, {transform_indices = @transform_10, window_bounds = array<i64: 1, 128, 256>}, {transform_indices = @transform_11, window_bounds = array<i64: 1, 1, 256>}, {transform_indices = @transform_12, window_bounds = array<i64: 1, 256, 128>}, {transform_indices = @transform_13, window_bounds = array<i64: 1, 1, 128>}, {transform_indices = @transform_14, window_bounds = array<i64: 1, 1, 128>}, {transform_indices = @transform_15, window_bounds = array<i64: 1, 1, 128>}, {pipeline_mode = #tpu.pipeline_mode<synchronous>, transform_indices = @transform_16, window_bounds = array<i64: 128, 128>}, {pipeline_mode = #tpu.pipeline_mode<synchronous>, transform_indices = @transform_17, window_bounds = array<i64: 1, 128>}, {pipeline_mode = #tpu.pipeline_mode<synchronous>, transform_indices = @transform_18, window_bounds = array<i64: 2, 128>}]} {
    %c0_i32 = arith.constant 0 : i32
    %0 = arith.cmpi eq, %arg0, %c0_i32 : i32
    %1 = arith.extui %0 : i1 to i32
    %c0_i32_0 = arith.constant 0 : i32
    %2 = arith.cmpi ne, %1, %c0_i32_0 : i32
    scf.if %2 {
      %c0_92 = arith.constant 0 : index
      %c0_93 = arith.constant 0 : index
      %196 = vector.load %arg1[%c0_92, %c0_93] : memref<16x128xf32, #tpu.memory_space<vmem>>, vector<16x128xf32>
      %c0_94 = arith.constant 0 : index
      %c0_95 = arith.constant 0 : index
      %197 = vector.load %arg3[%c0_94, %c0_95] : memref<1x128xf32, #tpu.memory_space<vmem>>, vector<1x128xf32>
      %c0_96 = arith.constant 0 : index
      %c0_97 = arith.constant 0 : index
      %198 = vector.load %arg4[%c0_96, %c0_97] : memref<1x128xf32, #tpu.memory_space<vmem>>, vector<1x128xf32>
      %cst_98 = arith.constant dense<0.000000e+00> : vector<16xf32>
      %199 = vector.multi_reduction <add>, %196, %cst_98 [1] : vector<16x128xf32> to vector<16xf32>
      %200 = vector.shape_cast %199 : vector<16xf32> to vector<16x1xf32>
      %cst_99 = arith.constant 1.280000e+02 : f32
      %201 = vector.broadcast %cst_99 : f32 to vector<16x1xf32>
      %202 = arith.divf %200, %201 : vector<16x1xf32>
      %203 = vector.broadcast %202 : vector<16x1xf32> to vector<16x128xf32>
      %204 = arith.subf %196, %203 : vector<16x128xf32>
      %205 = arith.mulf %204, %204 : vector<16x128xf32>
      %cst_100 = arith.constant dense<0.000000e+00> : vector<16xf32>
      %206 = vector.multi_reduction <add>, %205, %cst_100 [1] : vector<16x128xf32> to vector<16xf32>
      %207 = vector.shape_cast %206 : vector<16xf32> to vector<16x1xf32>
      %cst_101 = arith.constant 1.280000e+02 : f32
      %208 = vector.broadcast %cst_101 : f32 to vector<16x1xf32>
      %209 = arith.divf %207, %208 : vector<16x1xf32>
      %210 = vector.broadcast %202 : vector<16x1xf32> to vector<16x128xf32>
      %211 = arith.subf %196, %210 : vector<16x128xf32>
      %cst_102 = arith.constant 9.99999996E-13 : f32
      %212 = vector.broadcast %cst_102 : f32 to vector<16x1xf32>
      %213 = arith.addf %209, %212 : vector<16x1xf32>
      %214 = math.rsqrt %213 : vector<16x1xf32>
      %215 = vector.broadcast %214 : vector<16x1xf32> to vector<16x128xf32>
      %216 = arith.mulf %211, %215 : vector<16x128xf32>
      %217 = vector.broadcast %197 : vector<1x128xf32> to vector<16x128xf32>
      %218 = arith.mulf %216, %217 : vector<16x128xf32>
      %219 = vector.broadcast %198 : vector<1x128xf32> to vector<16x128xf32>
      %220 = arith.addf %218, %219 : vector<16x128xf32>
      %c0_103 = arith.constant 0 : index
      %c0_104 = arith.constant 0 : index
      %221 = vector.load %arg20[%c0_103, %c0_104] : memref<16x128xf32, #tpu.memory_space<vmem>>, vector<16x128xf32>
      tpu.vector_store %arg20[%c0_103, %c0_104], %220 {strides = array<i32>} : memref<16x128xf32, #tpu.memory_space<vmem>>, vector<16x128xf32>,
    } else {
    }
    %c0 = arith.constant 0 : index
    %c0_1 = arith.constant 0 : index
    %3 = vector.load %arg20[%c0, %c0_1] : memref<16x128xf32, #tpu.memory_space<vmem>>, vector<16x128xf32>
    %4 = arith.truncf %3 : vector<16x128xf32> to vector<16x128xbf16>
    %c0_2 = arith.constant 0 : index
    %c0_3 = arith.constant 0 : index
    %c0_4 = arith.constant 0 : index
    %5 = vector.load %arg5[%c0_2, %c0_3, %c0_4] : memref<1x128x384xbf16, #tpu.memory_space<vmem>>, vector<1x128x384xbf16>
    %6 = vector.shape_cast %5 : vector<1x128x384xbf16> to vector<128x384xbf16>
    %cst = arith.constant dense<0.000000e+00> : vector<16x384xf32>
    %7 = tpu.matmul %4, %6, %cst {dimension_numbers = #tpu.dot_dimension_numbers<[1], [0], [0], [1], [0, 0, 1, 1], [], []>} : vector<16x128xbf16>, vector<128x384xbf16>, vector<16x384xf32> -> vector<16x384xf32>
    %c0_5 = arith.constant 0 : index
    %c0_6 = arith.constant 0 : index
    %c0_7 = arith.constant 0 : index
    %8 = vector.load %arg6[%c0_5, %c0_6, %c0_7] : memref<1x1x384xf32, #tpu.memory_space<vmem>>, vector<1x1x384xf32>
    %9 = vector.shape_cast %8 : vector<1x1x384xf32> to vector<1x384xf32>
    %10 = vector.broadcast %9 : vector<1x384xf32> to vector<16x384xf32>
    %11 = arith.addf %7, %10 : vector<16x384xf32>
    %12 = vector.extract_strided_slice %11 {offsets = [0, 0], sizes = [16, 128], strides = [1, 1]} : vector<16x384xf32> to vector<16x128xf32>
    %13 = arith.truncf %12 : vector<16x128xf32> to vector<16x128xbf16>
    %14 = vector.extract_strided_slice %11 {offsets = [0, 128], sizes = [16, 128], strides = [1, 1]} : vector<16x384xf32> to vector<16x128xf32>
    %15 = arith.truncf %14 : vector<16x128xf32> to vector<16x128xbf16>
    %16 = vector.extract_strided_slice %11 {offsets = [0, 256], sizes = [16, 128], strides = [1, 1]} : vector<16x384xf32> to vector<16x128xf32>
    %17 = arith.truncf %16 : vector<16x128xf32> to vector<16x128xbf16>
    %18 = vector.extract_strided_slice %13 {offsets = [0, 0], sizes = [16, 32], strides = [1, 1]} : vector<16x128xbf16> to vector<16x32xbf16>
    %19 = vector.extract_strided_slice %15 {offsets = [0, 0], sizes = [16, 32], strides = [1, 1]} : vector<16x128xbf16> to vector<16x32xbf16>
    %cst_8 = arith.constant dense<0.000000e+00> : vector<16x16xf32>
    %20 = tpu.matmul %18, %19, %cst_8 {dimension_numbers = #tpu.dot_dimension_numbers<[1], [1], [0], [0], [0, 0, 1, 0], [], []>} : vector<16x32xbf16>, vector<16x32xbf16>, vector<16x16xf32> -> vector<16x16xf32>
    %21 = vector.extract_strided_slice %13 {offsets = [0, 32], sizes = [16, 32], strides = [1, 1]} : vector<16x128xbf16> to vector<16x32xbf16>
    %22 = vector.extract_strided_slice %15 {offsets = [0, 32], sizes = [16, 32], strides = [1, 1]} : vector<16x128xbf16> to vector<16x32xbf16>
    %cst_9 = arith.constant dense<0.000000e+00> : vector<16x16xf32>
    %23 = tpu.matmul %21, %22, %cst_9 {dimension_numbers = #tpu.dot_dimension_numbers<[1], [1], [0], [0], [0, 0, 1, 0], [], []>} : vector<16x32xbf16>, vector<16x32xbf16>, vector<16x16xf32> -> vector<16x16xf32>
    %24 = vector.extract_strided_slice %13 {offsets = [0, 64], sizes = [16, 32], strides = [1, 1]} : vector<16x128xbf16> to vector<16x32xbf16>
    %25 = vector.extract_strided_slice %15 {offsets = [0, 64], sizes = [16, 32], strides = [1, 1]} : vector<16x128xbf16> to vector<16x32xbf16>
    %cst_10 = arith.constant dense<0.000000e+00> : vector<16x16xf32>
    %26 = tpu.matmul %24, %25, %cst_10 {dimension_numbers = #tpu.dot_dimension_numbers<[1], [1], [0], [0], [0, 0, 1, 0], [], []>} : vector<16x32xbf16>, vector<16x32xbf16>, vector<16x16xf32> -> vector<16x16xf32>
    %27 = vector.extract_strided_slice %13 {offsets = [0, 96], sizes = [16, 32], strides = [1, 1]} : vector<16x128xbf16> to vector<16x32xbf16>
    %28 = vector.extract_strided_slice %15 {offsets = [0, 96], sizes = [16, 32], strides = [1, 1]} : vector<16x128xbf16> to vector<16x32xbf16>
    %cst_11 = arith.constant dense<0.000000e+00> : vector<16x16xf32>
    %29 = tpu.matmul %27, %28, %cst_11 {dimension_numbers = #tpu.dot_dimension_numbers<[1], [1], [0], [0], [0, 0, 1, 0], [], []>} : vector<16x32xbf16>, vector<16x32xbf16>, vector<16x16xf32> -> vector<16x16xf32>
    %30 = tpu.concatenate %20, %23, %26, %29 in 0 : vector<16x16xf32>, vector<16x16xf32>, vector<16x16xf32>, vector<16x16xf32> -> vector<64x16xf32>
    %c0_12 = arith.constant 0 : index
    %c0_13 = arith.constant 0 : index
    %31 = vector.load %arg2[%c0_12, %c0_13] : memref<64x16xf32, #tpu.memory_space<vmem>>, vector<64x16xf32>
    %32 = arith.addf %30, %31 : vector<64x16xf32>
    %cst_14 = arith.constant dense<0xFF800000> : vector<64xf32>
    %33 = vector.multi_reduction <maximumf>, %32, %cst_14 [1] : vector<64x16xf32> to vector<64xf32>
    %34 = vector.shape_cast %33 : vector<64xf32> to vector<64x1xf32>
    %35 = vector.broadcast %34 : vector<64x1xf32> to vector<64x16xf32>
    %36 = arith.subf %32, %35 : vector<64x16xf32>
    %37 = math.exp %36 : vector<64x16xf32>
    %cst_15 = arith.constant dense<0.000000e+00> : vector<64xf32>
    %38 = vector.multi_reduction <add>, %37, %cst_15 [1] : vector<64x16xf32> to vector<64xf32>
    %39 = vector.shape_cast %38 : vector<64xf32> to vector<64x1xf32>
    %40 = tpu.reciprocal %39 {approx = true} : vector<64x1xf32> -> vector<64x1xf32>
    %41 = vector.broadcast %40 : vector<64x1xf32> to vector<64x16xf32>
    %42 = arith.mulf %37, %41 : vector<64x16xf32>
    %43 = arith.truncf %42 : vector<64x16xf32> to vector<64x16xbf16>
    %cst_16 = arith.constant 0.000000e+00 : f32
    %44 = vector.broadcast %cst_16 : f32 to vector<16x128xf32>
    %45 = vector.extract_strided_slice %43 {offsets = [0, 0], sizes = [16, 16], strides = [1, 1]} : vector<64x16xbf16> to vector<16x16xbf16>
    %46 = vector.extract_strided_slice %17 {offsets = [0, 0], sizes = [16, 32], strides = [1, 1]} : vector<16x128xbf16> to vector<16x32xbf16>
    %cst_17 = arith.constant dense<0.000000e+00> : vector<16x32xf32>
    %47 = tpu.matmul %45, %46, %cst_17 {dimension_numbers = #tpu.dot_dimension_numbers<[1], [0], [0], [1], [0, 0, 1, 1], [], []>} : vector<16x16xbf16>, vector<16x32xbf16>, vector<16x32xf32> -> vector<16x32xf32>
    %48 = arith.truncf %47 : vector<16x32xf32> to vector<16x32xbf16>
    %c0_18 = arith.constant 0 : index
    %c0_19 = arith.constant 0 : index
    %c0_20 = arith.constant 0 : index
    %49 = vector.load %arg7[%c0_18, %c0_19, %c0_20] : memref<1x128x128xbf16, #tpu.memory_space<vmem>>, vector<1x32x128xbf16>
    %50 = vector.shape_cast %49 : vector<1x32x128xbf16> to vector<32x128xbf16>
    %cst_21 = arith.constant dense<0.000000e+00> : vector<16x128xf32>
    %51 = tpu.matmul %48, %50, %cst_21 {dimension_numbers = #tpu.dot_dimension_numbers<[1], [0], [0], [1], [0, 0, 1, 1], [], []>} : vector<16x32xbf16>, vector<32x128xbf16>, vector<16x128xf32> -> vector<16x128xf32>
    %52 = arith.addf %44, %51 : vector<16x128xf32>
    %53 = vector.extract_strided_slice %43 {offsets = [16, 0], sizes = [16, 16], strides = [1, 1]} : vector<64x16xbf16> to vector<16x16xbf16>
    %54 = vector.extract_strided_slice %17 {offsets = [0, 32], sizes = [16, 32], strides = [1, 1]} : vector<16x128xbf16> to vector<16x32xbf16>
    %cst_22 = arith.constant dense<0.000000e+00> : vector<16x32xf32>
    %55 = tpu.matmul %53, %54, %cst_22 {dimension_numbers = #tpu.dot_dimension_numbers<[1], [0], [0], [1], [0, 0, 1, 1], [], []>} : vector<16x16xbf16>, vector<16x32xbf16>, vector<16x32xf32> -> vector<16x32xf32>
    %56 = arith.truncf %55 : vector<16x32xf32> to vector<16x32xbf16>
    %c0_23 = arith.constant 0 : index
    %c32 = arith.constant 32 : index
    %c0_24 = arith.constant 0 : index
    %57 = vector.load %arg7[%c0_23, %c32, %c0_24] : memref<1x128x128xbf16, #tpu.memory_space<vmem>>, vector<1x32x128xbf16>
    %58 = vector.shape_cast %57 : vector<1x32x128xbf16> to vector<32x128xbf16>
    %cst_25 = arith.constant dense<0.000000e+00> : vector<16x128xf32>
    %59 = tpu.matmul %56, %58, %cst_25 {dimension_numbers = #tpu.dot_dimension_numbers<[1], [0], [0], [1], [0, 0, 1, 1], [], []>} : vector<16x32xbf16>, vector<32x128xbf16>, vector<16x128xf32> -> vector<16x128xf32>
    %60 = arith.addf %52, %59 : vector<16x128xf32>
    %61 = vector.extract_strided_slice %43 {offsets = [32, 0], sizes = [16, 16], strides = [1, 1]} : vector<64x16xbf16> to vector<16x16xbf16>
    %62 = vector.extract_strided_slice %17 {offsets = [0, 64], sizes = [16, 32], strides = [1, 1]} : vector<16x128xbf16> to vector<16x32xbf16>
    %cst_26 = arith.constant dense<0.000000e+00> : vector<16x32xf32>
    %63 = tpu.matmul %61, %62, %cst_26 {dimension_numbers = #tpu.dot_dimension_numbers<[1], [0], [0], [1], [0, 0, 1, 1], [], []>} : vector<16x16xbf16>, vector<16x32xbf16>, vector<16x32xf32> -> vector<16x32xf32>
    %64 = arith.truncf %63 : vector<16x32xf32> to vector<16x32xbf16>
    %c0_27 = arith.constant 0 : index
    %c64 = arith.constant 64 : index
    %c0_28 = arith.constant 0 : index
    %65 = vector.load %arg7[%c0_27, %c64, %c0_28] : memref<1x128x128xbf16, #tpu.memory_space<vmem>>, vector<1x32x128xbf16>
    %66 = vector.shape_cast %65 : vector<1x32x128xbf16> to vector<32x128xbf16>
    %cst_29 = arith.constant dense<0.000000e+00> : vector<16x128xf32>
    %67 = tpu.matmul %64, %66, %cst_29 {dimension_numbers = #tpu.dot_dimension_numbers<[1], [0], [0], [1], [0, 0, 1, 1], [], []>} : vector<16x32xbf16>, vector<32x128xbf16>, vector<16x128xf32> -> vector<16x128xf32>
    %68 = arith.addf %60, %67 : vector<16x128xf32>
    %69 = vector.extract_strided_slice %43 {offsets = [48, 0], sizes = [16, 16], strides = [1, 1]} : vector<64x16xbf16> to vector<16x16xbf16>
    %70 = vector.extract_strided_slice %17 {offsets = [0, 96], sizes = [16, 32], strides = [1, 1]} : vector<16x128xbf16> to vector<16x32xbf16>
    %cst_30 = arith.constant dense<0.000000e+00> : vector<16x32xf32>
    %71 = tpu.matmul %69, %70, %cst_30 {dimension_numbers = #tpu.dot_dimension_numbers<[1], [0], [0], [1], [0, 0, 1, 1], [], []>} : vector<16x16xbf16>, vector<16x32xbf16>, vector<16x32xf32> -> vector<16x32xf32>
    %72 = arith.truncf %71 : vector<16x32xf32> to vector<16x32xbf16>
    %c0_31 = arith.constant 0 : index
    %c96 = arith.constant 96 : index
    %c0_32 = arith.constant 0 : index
    %73 = vector.load %arg7[%c0_31, %c96, %c0_32] : memref<1x128x128xbf16, #tpu.memory_space<vmem>>, vector<1x32x128xbf16>
    %74 = vector.shape_cast %73 : vector<1x32x128xbf16> to vector<32x128xbf16>
    %cst_33 = arith.constant dense<0.000000e+00> : vector<16x128xf32>
    %75 = tpu.matmul %72, %74, %cst_33 {dimension_numbers = #tpu.dot_dimension_numbers<[1], [0], [0], [1], [0, 0, 1, 1], [], []>} : vector<16x32xbf16>, vector<32x128xbf16>, vector<16x128xf32> -> vector<16x128xf32>
    %76 = arith.addf %68, %75 : vector<16x128xf32>
    %c0_34 = arith.constant 0 : index
    %c0_35 = arith.constant 0 : index
    %c0_36 = arith.constant 0 : index
    %77 = vector.load %arg8[%c0_34, %c0_35, %c0_36] : memref<1x1x128xf32, #tpu.memory_space<vmem>>, vector<1x1x128xf32>
    %78 = vector.shape_cast %77 : vector<1x1x128xf32> to vector<1x128xf32>
    %79 = vector.broadcast %78 : vector<1x128xf32> to vector<16x128xf32>
    %80 = arith.addf %76, %79 : vector<16x128xf32>
    %81 = arith.addf %3, %80 : vector<16x128xf32>
    %c0_37 = arith.constant 0 : index
    %c0_38 = arith.constant 0 : index
    %c0_39 = arith.constant 0 : index
    %82 = vector.load %arg9[%c0_37, %c0_38, %c0_39] : memref<1x1x128xf32, #tpu.memory_space<vmem>>, vector<1x1x128xf32>
    %83 = vector.shape_cast %82 : vector<1x1x128xf32> to vector<1x128xf32>
    %c0_40 = arith.constant 0 : index
    %c0_41 = arith.constant 0 : index
    %c0_42 = arith.constant 0 : index
    %84 = vector.load %arg10[%c0_40, %c0_41, %c0_42] : memref<1x1x128xf32, #tpu.memory_space<vmem>>, vector<1x1x128xf32>
    %85 = vector.shape_cast %84 : vector<1x1x128xf32> to vector<1x128xf32>
    %cst_43 = arith.constant dense<0.000000e+00> : vector<16xf32>
    %86 = vector.multi_reduction <add>, %81, %cst_43 [1] : vector<16x128xf32> to vector<16xf32>
    %87 = vector.shape_cast %86 : vector<16xf32> to vector<16x1xf32>
    %cst_44 = arith.constant 1.280000e+02 : f32
    %88 = vector.broadcast %cst_44 : f32 to vector<16x1xf32>
    %89 = arith.divf %87, %88 : vector<16x1xf32>
    %90 = vector.broadcast %89 : vector<16x1xf32> to vector<16x128xf32>
    %91 = arith.subf %81, %90 : vector<16x128xf32>
    %92 = arith.mulf %91, %91 : vector<16x128xf32>
    %cst_45 = arith.constant dense<0.000000e+00> : vector<16xf32>
    %93 = vector.multi_reduction <add>, %92, %cst_45 [1] : vector<16x128xf32> to vector<16xf32>
    %94 = vector.shape_cast %93 : vector<16xf32> to vector<16x1xf32>
    %cst_46 = arith.constant 1.280000e+02 : f32
    %95 = vector.broadcast %cst_46 : f32 to vector<16x1xf32>
    %96 = arith.divf %94, %95 : vector<16x1xf32>
    %97 = vector.broadcast %89 : vector<16x1xf32> to vector<16x128xf32>
    %98 = arith.subf %81, %97 : vector<16x128xf32>
    %cst_47 = arith.constant 9.99999996E-13 : f32
    %99 = vector.broadcast %cst_47 : f32 to vector<16x1xf32>
    %100 = arith.addf %96, %99 : vector<16x1xf32>
    %101 = math.rsqrt %100 : vector<16x1xf32>
    %102 = vector.broadcast %101 : vector<16x1xf32> to vector<16x128xf32>
    %103 = arith.mulf %98, %102 : vector<16x128xf32>
    %104 = vector.broadcast %83 : vector<1x128xf32> to vector<16x128xf32>
    %105 = arith.mulf %103, %104 : vector<16x128xf32>
    %106 = vector.broadcast %85 : vector<1x128xf32> to vector<16x128xf32>
    %107 = arith.addf %105, %106 : vector<16x128xf32>
    %108 = arith.truncf %107 : vector<16x128xf32> to vector<16x128xbf16>
    %c0_48 = arith.constant 0 : index
    %c0_49 = arith.constant 0 : index
    %c0_50 = arith.constant 0 : index
    %109 = vector.load %arg11[%c0_48, %c0_49, %c0_50] : memref<1x128x256xbf16, #tpu.memory_space<vmem>>, vector<1x128x256xbf16>
    %110 = vector.shape_cast %109 : vector<1x128x256xbf16> to vector<128x256xbf16>
    %cst_51 = arith.constant dense<0.000000e+00> : vector<16x256xf32>
    %111 = tpu.matmul %108, %110, %cst_51 {dimension_numbers = #tpu.dot_dimension_numbers<[1], [0], [0], [1], [0, 0, 1, 1], [], []>} : vector<16x128xbf16>, vector<128x256xbf16>, vector<16x256xf32> -> vector<16x256xf32>
    %c0_52 = arith.constant 0 : index
    %c0_53 = arith.constant 0 : index
    %c0_54 = arith.constant 0 : index
    %112 = vector.load %arg12[%c0_52, %c0_53, %c0_54] : memref<1x1x256xf32, #tpu.memory_space<vmem>>, vector<1x1x256xf32>
    %113 = vector.shape_cast %112 : vector<1x1x256xf32> to vector<1x256xf32>
    %114 = vector.broadcast %113 : vector<1x256xf32> to vector<16x256xf32>
    %115 = arith.addf %111, %114 : vector<16x256xf32>
    %cst_55 = arith.constant 5.000000e-01 : f32
    %116 = vector.broadcast %cst_55 : f32 to vector<16x256xf32>
    %117 = arith.mulf %116, %115 : vector<16x256xf32>
    %cst_56 = arith.constant 0.707106769 : f32
    %118 = vector.broadcast %cst_56 : f32 to vector<16x256xf32>
    %119 = arith.mulf %115, %118 : vector<16x256xf32>
    %cst_57 = arith.constant 0.000000e+00 : f32
    %120 = vector.broadcast %cst_57 : f32 to vector<16x256xf32>
    %121 = arith.cmpf oge, %119, %120 : vector<16x256xf32>
    %cst_58 = arith.constant 1.000000e+00 : f32
    %cst_59 = arith.constant -1.000000e+00 : f32
    %122 = vector.broadcast %cst_58 : f32 to vector<16x256xf32>
    %123 = vector.broadcast %cst_59 : f32 to vector<16x256xf32>
    %124 = arith.select %121, %122, %123 : vector<16x256xi1>, vector<16x256xf32>
    %125 = math.absf %119 : vector<16x256xf32>
    %cst_60 = arith.constant 0.327591091 : f32
    %126 = vector.broadcast %cst_60 : f32 to vector<16x256xf32>
    %127 = arith.mulf %126, %125 : vector<16x256xf32>
    %cst_61 = arith.constant 1.000000e+00 : f32
    %128 = vector.broadcast %cst_61 : f32 to vector<16x256xf32>
    %129 = arith.addf %128, %127 : vector<16x256xf32>
    %cst_62 = arith.constant 1.000000e+00 : f32
    %130 = vector.broadcast %cst_62 : f32 to vector<16x256xf32>
    %131 = arith.divf %130, %129 : vector<16x256xf32>
    %cst_63 = arith.constant 1.06140542 : f32
    %132 = vector.broadcast %cst_63 : f32 to vector<16x256xf32>
    %133 = arith.mulf %132, %131 : vector<16x256xf32>
    %cst_64 = arith.constant 1.45315206 : f32
    %134 = vector.broadcast %cst_64 : f32 to vector<16x256xf32>
    %135 = arith.subf %133, %134 : vector<16x256xf32>
    %136 = arith.mulf %135, %131 : vector<16x256xf32>
    %cst_65 = arith.constant 1.42141378 : f32
    %137 = vector.broadcast %cst_65 : f32 to vector<16x256xf32>
    %138 = arith.addf %136, %137 : vector<16x256xf32>
    %139 = arith.mulf %138, %131 : vector<16x256xf32>
    %cst_66 = arith.constant 0.284496725 : f32
    %140 = vector.broadcast %cst_66 : f32 to vector<16x256xf32>
    %141 = arith.subf %139, %140 : vector<16x256xf32>
    %142 = arith.mulf %141, %131 : vector<16x256xf32>
    %cst_67 = arith.constant 0.254829586 : f32
    %143 = vector.broadcast %cst_67 : f32 to vector<16x256xf32>
    %144 = arith.addf %142, %143 : vector<16x256xf32>
    %145 = arith.mulf %144, %131 : vector<16x256xf32>
    %cst_68 = arith.constant 0.000000e+00 : f32
    %146 = vector.broadcast %cst_68 : f32 to vector<16x256xf32>
    %147 = arith.subf %146, %125 : vector<16x256xf32>
    %148 = arith.mulf %147, %125 : vector<16x256xf32>
    %149 = math.exp %148 : vector<16x256xf32>
    %150 = arith.mulf %145, %149 : vector<16x256xf32>
    %cst_69 = arith.constant 1.000000e+00 : f32
    %151 = vector.broadcast %cst_69 : f32 to vector<16x256xf32>
    %152 = arith.subf %151, %150 : vector<16x256xf32>
    %153 = arith.mulf %124, %152 : vector<16x256xf32>
    %cst_70 = arith.constant 1.000000e+00 : f32
    %154 = vector.broadcast %cst_70 : f32 to vector<16x256xf32>
    %155 = arith.addf %154, %153 : vector<16x256xf32>
    %156 = arith.mulf %117, %155 : vector<16x256xf32>
    %157 = arith.truncf %156 : vector<16x256xf32> to vector<16x256xbf16>
    %c0_71 = arith.constant 0 : index
    %c0_72 = arith.constant 0 : index
    %c0_73 = arith.constant 0 : index
    %158 = vector.load %arg13[%c0_71, %c0_72, %c0_73] : memref<1x256x128xbf16, #tpu.memory_space<vmem>>, vector<1x256x128xbf16>
    %159 = vector.shape_cast %158 : vector<1x256x128xbf16> to vector<256x128xbf16>
    %cst_74 = arith.constant dense<0.000000e+00> : vector<16x128xf32>
    %160 = tpu.matmul %157, %159, %cst_74 {dimension_numbers = #tpu.dot_dimension_numbers<[1], [0], [0], [1], [0, 0, 1, 1], [], []>} : vector<16x256xbf16>, vector<256x128xbf16>, vector<16x128xf32> -> vector<16x128xf32>
    %c0_75 = arith.constant 0 : index
    %c0_76 = arith.constant 0 : index
    %c0_77 = arith.constant 0 : index
    %161 = vector.load %arg14[%c0_75, %c0_76, %c0_77] : memref<1x1x128xf32, #tpu.memory_space<vmem>>, vector<1x1x128xf32>
    %162 = vector.shape_cast %161 : vector<1x1x128xf32> to vector<1x128xf32>
    %163 = vector.broadcast %162 : vector<1x128xf32> to vector<16x128xf32>
    %164 = arith.addf %160, %163 : vector<16x128xf32>
    %165 = arith.addf %107, %164 : vector<16x128xf32>
    %c0_78 = arith.constant 0 : index
    %c0_79 = arith.constant 0 : index
    %c0_80 = arith.constant 0 : index
    %166 = vector.load %arg15[%c0_78, %c0_79, %c0_80] : memref<1x1x128xf32, #tpu.memory_space<vmem>>, vector<1x1x128xf32>
    %167 = vector.shape_cast %166 : vector<1x1x128xf32> to vector<1x128xf32>
    %c0_81 = arith.constant 0 : index
    %c0_82 = arith.constant 0 : index
    %c0_83 = arith.constant 0 : index
    %168 = vector.load %arg16[%c0_81, %c0_82, %c0_83] : memref<1x1x128xf32, #tpu.memory_space<vmem>>, vector<1x1x128xf32>
    %169 = vector.shape_cast %168 : vector<1x1x128xf32> to vector<1x128xf32>
    %cst_84 = arith.constant dense<0.000000e+00> : vector<16xf32>
    %170 = vector.multi_reduction <add>, %165, %cst_84 [1] : vector<16x128xf32> to vector<16xf32>
    %171 = vector.shape_cast %170 : vector<16xf32> to vector<16x1xf32>
    %cst_85 = arith.constant 1.280000e+02 : f32
    %172 = vector.broadcast %cst_85 : f32 to vector<16x1xf32>
    %173 = arith.divf %171, %172 : vector<16x1xf32>
    %174 = vector.broadcast %173 : vector<16x1xf32> to vector<16x128xf32>
    %175 = arith.subf %165, %174 : vector<16x128xf32>
    %176 = arith.mulf %175, %175 : vector<16x128xf32>
    %cst_86 = arith.constant dense<0.000000e+00> : vector<16xf32>
    %177 = vector.multi_reduction <add>, %176, %cst_86 [1] : vector<16x128xf32> to vector<16xf32>
    %178 = vector.shape_cast %177 : vector<16xf32> to vector<16x1xf32>
    %cst_87 = arith.constant 1.280000e+02 : f32
    %179 = vector.broadcast %cst_87 : f32 to vector<16x1xf32>
    %180 = arith.divf %178, %179 : vector<16x1xf32>
    %181 = vector.broadcast %173 : vector<16x1xf32> to vector<16x128xf32>
    %182 = arith.subf %165, %181 : vector<16x128xf32>
    %cst_88 = arith.constant 9.99999996E-13 : f32
    %183 = vector.broadcast %cst_88 : f32 to vector<16x1xf32>
    %184 = arith.addf %180, %183 : vector<16x1xf32>
    %185 = math.rsqrt %184 : vector<16x1xf32>
    %186 = vector.broadcast %185 : vector<16x1xf32> to vector<16x128xf32>
    %187 = arith.mulf %182, %186 : vector<16x128xf32>
    %188 = vector.broadcast %167 : vector<1x128xf32> to vector<16x128xf32>
    %189 = arith.mulf %187, %188 : vector<16x128xf32>
    %190 = vector.broadcast %169 : vector<1x128xf32> to vector<16x128xf32>
    %191 = arith.addf %189, %190 : vector<16x128xf32>
    %c0_89 = arith.constant 0 : index
    %c0_90 = arith.constant 0 : index
    %192 = vector.load %arg20[%c0_89, %c0_90] : memref<16x128xf32, #tpu.memory_space<vmem>>, vector<16x128xf32>
    tpu.vector_store %arg20[%c0_89, %c0_90], %191 {strides = array<i32>} : memref<16x128xf32, #tpu.memory_space<vmem>>, vector<16x128xf32>,
    %c1_i32 = arith.constant 1 : i32
    %193 = arith.cmpi eq, %arg0, %c1_i32 : i32
    %194 = arith.extui %193 : i1 to i32
    %c0_i32_91 = arith.constant 0 : i32
    %195 = arith.cmpi ne, %194, %c0_i32_91 : i32
    scf.if %195 {
      %196 = vector.extract_strided_slice %191 {offsets = [0, 0], sizes = [1, 128], strides = [1, 1]} : vector<16x128xf32> to vector<1x128xf32>
      %197 = vector.extract_strided_slice %191 {offsets = [8, 0], sizes = [1, 128], strides = [1, 1]} : vector<16x128xf32> to vector<1x128xf32>
      %198 = tpu.concatenate %196, %197 in 0 : vector<1x128xf32>, vector<1x128xf32> -> vector<2x128xf32>
      %199 = arith.truncf %198 : vector<2x128xf32> to vector<2x128xbf16>
      %c0_92 = arith.constant 0 : index
      %c0_93 = arith.constant 0 : index
      %200 = vector.load %arg17[%c0_92, %c0_93] : memref<128x128xbf16, #tpu.memory_space<vmem>>, vector<128x128xbf16>
      %cst_94 = arith.constant dense<0.000000e+00> : vector<2x128xf32>
      %201 = tpu.matmul %199, %200, %cst_94 {dimension_numbers = #tpu.dot_dimension_numbers<[1], [0], [0], [1], [0, 0, 1, 1], [], []>} : vector<2x128xbf16>, vector<128x128xbf16>, vector<2x128xf32> -> vector<2x128xf32>
      %c0_95 = arith.constant 0 : index
      %c0_96 = arith.constant 0 : index
      %202 = vector.load %arg18[%c0_95, %c0_96] : memref<1x128xf32, #tpu.memory_space<vmem>>, vector<1x128xf32>
      %203 = vector.broadcast %202 : vector<1x128xf32> to vector<2x128xf32>
      %204 = arith.addf %201, %203 : vector<2x128xf32>
      %c0_97 = arith.constant 0 : index
      %c0_98 = arith.constant 0 : index
      %205 = vector.load %arg19[%c0_97, %c0_98] : memref<2x128xf32, #tpu.memory_space<vmem>>, vector<2x128xf32>
      tpu.vector_store %arg19[%c0_97, %c0_98], %204 {strides = array<i32>} : memref<2x128xf32, #tpu.memory_space<vmem>>, vector<2x128xf32>,
    } else {
    }
    return
  }
  func.func @transform_0(%arg0: i32) -> (i32, i32) {
    %c0_i32 = arith.constant 0 : i32
    %c0_i32_0 = arith.constant 0 : i32
    %c0_i32_1 = arith.constant 0 : i32
    return %c0_i32, %c0_i32_0 : i32, i32
  }
  func.func @transform_1(%arg0: i32) -> (i32, i32) {
    %c0_i32 = arith.constant 0 : i32
    %c0_i32_0 = arith.constant 0 : i32
    %c0_i32_1 = arith.constant 0 : i32
    return %c0_i32, %c0_i32_0 : i32, i32
  }
  func.func @transform_2(%arg0: i32) -> (i32, i32) {
    %c0_i32 = arith.constant 0 : i32
    %c0_i32_0 = arith.constant 0 : i32
    %c0_i32_1 = arith.constant 0 : i32
    return %c0_i32, %c0_i32_0 : i32, i32
  }
  func.func @transform_3(%arg0: i32) -> (i32, i32) {
    %c0_i32 = arith.constant 0 : i32
    %c0_i32_0 = arith.constant 0 : i32
    %c0_i32_1 = arith.constant 0 : i32
    return %c0_i32, %c0_i32_0 : i32, i32
  }
  func.func @transform_4(%arg0: i32) -> (i32, i32, i32) {
    %c0_i32 = arith.constant 0 : i32
    %c0_i32_0 = arith.constant 0 : i32
    %c0_i32_1 = arith.constant 0 : i32
    return %arg0, %c0_i32, %c0_i32_0 : i32, i32, i32
  }
  func.func @transform_5(%arg0: i32) -> (i32, i32, i32) {
    %c0_i32 = arith.constant 0 : i32
    %c0_i32_0 = arith.constant 0 : i32
    %c0_i32_1 = arith.constant 0 : i32
    return %arg0, %c0_i32, %c0_i32_0 : i32, i32, i32
  }
  func.func @transform_6(%arg0: i32) -> (i32, i32, i32) {
    %c0_i32 = arith.constant 0 : i32
    %c0_i32_0 = arith.constant 0 : i32
    %c0_i32_1 = arith.constant 0 : i32
    return %arg0, %c0_i32, %c0_i32_0 : i32, i32, i32
  }
  func.func @transform_7(%arg0: i32) -> (i32, i32, i32) {
    %c0_i32 = arith.constant 0 : i32
    %c0_i32_0 = arith.constant 0 : i32
    %c0_i32_1 = arith.constant 0 : i32
    return %arg0, %c0_i32, %c0_i32_0 : i32, i32, i32
  }
  func.func @transform_8(%arg0: i32) -> (i32, i32, i32) {
    %c0_i32 = arith.constant 0 : i32
    %c0_i32_0 = arith.constant 0 : i32
    %c0_i32_1 = arith.constant 0 : i32
    return %arg0, %c0_i32, %c0_i32_0 : i32, i32, i32
  }
  func.func @transform_9(%arg0: i32) -> (i32, i32, i32) {
    %c0_i32 = arith.constant 0 : i32
    %c0_i32_0 = arith.constant 0 : i32
    %c0_i32_1 = arith.constant 0 : i32
    return %arg0, %c0_i32, %c0_i32_0 : i32, i32, i32
  }
  func.func @transform_10(%arg0: i32) -> (i32, i32, i32) {
    %c0_i32 = arith.constant 0 : i32
    %c0_i32_0 = arith.constant 0 : i32
    %c0_i32_1 = arith.constant 0 : i32
    return %arg0, %c0_i32, %c0_i32_0 : i32, i32, i32
  }
  func.func @transform_11(%arg0: i32) -> (i32, i32, i32) {
    %c0_i32 = arith.constant 0 : i32
    %c0_i32_0 = arith.constant 0 : i32
    %c0_i32_1 = arith.constant 0 : i32
    return %arg0, %c0_i32, %c0_i32_0 : i32, i32, i32
  }
  func.func @transform_12(%arg0: i32) -> (i32, i32, i32) {
    %c0_i32 = arith.constant 0 : i32
    %c0_i32_0 = arith.constant 0 : i32
    %c0_i32_1 = arith.constant 0 : i32
    return %arg0, %c0_i32, %c0_i32_0 : i32, i32, i32
  }
  func.func @transform_13(%arg0: i32) -> (i32, i32, i32) {
    %c0_i32 = arith.constant 0 : i32
    %c0_i32_0 = arith.constant 0 : i32
    %c0_i32_1 = arith.constant 0 : i32
    return %arg0, %c0_i32, %c0_i32_0 : i32, i32, i32
  }
  func.func @transform_14(%arg0: i32) -> (i32, i32, i32) {
    %c0_i32 = arith.constant 0 : i32
    %c0_i32_0 = arith.constant 0 : i32
    %c0_i32_1 = arith.constant 0 : i32
    return %arg0, %c0_i32, %c0_i32_0 : i32, i32, i32
  }
  func.func @transform_15(%arg0: i32) -> (i32, i32, i32) {
    %c0_i32 = arith.constant 0 : i32
    %c0_i32_0 = arith.constant 0 : i32
    %c0_i32_1 = arith.constant 0 : i32
    return %arg0, %c0_i32, %c0_i32_0 : i32, i32, i32
  }
  func.func @transform_16(%arg0: i32) -> (i32, i32) {
    %c0_i32 = arith.constant 0 : i32
    %c0_i32_0 = arith.constant 0 : i32
    %c0_i32_1 = arith.constant 0 : i32
    return %c0_i32, %c0_i32_0 : i32, i32
  }
  func.func @transform_17(%arg0: i32) -> (i32, i32) {
    %c0_i32 = arith.constant 0 : i32
    %c0_i32_0 = arith.constant 0 : i32
    %c0_i32_1 = arith.constant 0 : i32
    return %c0_i32, %c0_i32_0 : i32, i32
  }
  func.func @transform_18(%arg0: i32) -> (i32, i32) {
    %c0_i32 = arith.constant 0 : i32
    %c0_i32_0 = arith.constant 0 : i32
    %c0_i32_1 = arith.constant 0 : i32
    return %c0_i32, %c0_i32_0 : i32, i32
  }
}

</mosaic_0001>

<bundles_post_ra>
// kernel: multilabel_bert_forward.1
= control target key start
LH: loop header
LB: loop body
LE: loop exit
PB: predicated region body
PF: predicated region fallthrough
CT: control target
= control target key end

     0   :  { %s4101_s0 = inlined_call_operand.vmem [shape: f32[16,128], index: 0, kind: input, shape index: {}]   ;;  %s4102_s1 = inlined_call_operand.vmem [shape: f32[64,16], index: 1, kind: input, shape index: {}]   ;;  %s4103_s2 = inlined_call_operand.vmem [shape: f32[1,128], index: 2, kind: input, shape index: {}]   ;;  %s4104_s3 = inlined_call_operand.vmem [shape: f32[1,128], index: 3, kind: input, shape index: {}]   ;;  %s4105_s4 = inlined_call_operand.hbm [shape: bf16[2,128,384], index: 4, kind: input, shape index: {}]   ;;  %s4106_s5 = inlined_call_operand.vmem [shape: f32[2,1,384], index: 5, kind: input, shape index: {}]   ;;  %s4107_s6 = inlined_call_operand.hbm [shape: bf16[2,128,128], index: 6, kind: input, shape index: {}]   ;;  %s4108_s7 = inlined_call_operand.vmem [shape: f32[2,1,128], index: 7, kind: input, shape index: {}]   ;;  %s4109_s8 = inlined_call_operand.vmem [shape: f32[2,1,128], index: 8, kind: input, shape index: {}]   ;;  %s4110_s9 = inlined_call_operand.vmem [shape: f32[2,1,128], index: 9, kind: input, shape index: {}]   ;;  %s4111_s10 = inlined_call_operand.vmem [shape: bf16[2,128,256], index: 10, kind: input, shape index: {}]   ;;  %s4112_s11 = inlined_call_operand.vmem [shape: f32[2,1,256], index: 11, kind: input, shape index: {}]   ;;  %s4113_s12 = inlined_call_operand.hbm [shape: bf16[2,256,128], index: 12, kind: input, shape index: {}]   ;;  %s4114_s13 = inlined_call_operand.vmem [shape: f32[2,1,128], index: 13, kind: input, shape index: {}]   ;;  %s4115_s14 = inlined_call_operand.vmem [shape: f32[2,1,128], index: 14, kind: input, shape index: {}]   ;;  %s4116_s15 = inlined_call_operand.vmem [shape: f32[2,1,128], index: 15, kind: input, shape index: {}]   ;;  %s4117_s16 = inlined_call_operand.vmem [shape: bf16[128,128], index: 16, kind: input, shape index: {}]   ;;  %s4118_s17 = inlined_call_operand.vmem [shape: f32[1,128], index: 17, kind: input, shape index: {}]   ;;  %s4119_s18 = inlined_call_operand.hbm [shape: f32[2,128], index: 18, kind: output, shape index: {}]  }
   0x1   :  { %4130 = sst [smem:[#allocation16_spill]] %s4101_s0 }
   0x2   :  { %4131 = sst [smem:[#allocation17_spill]] %s4102_s1 }
   0x3   :  { %4132 = sst [smem:[#allocation18_spill]] %s4103_s2 }
   0x4   :  { %4133 = sst [smem:[#allocation19_spill]] %s4104_s3 }
   0x5   :  { %4134 = sst [smem:[#allocation20_spill]] %s4105_s4 }
   0x6   :  { %4135 = sst [smem:[#allocation21_spill]] %s4106_s5 }
   0x7   :  { %4136 = sst [smem:[#allocation22_spill]] %s4107_s6 }
   0x8   :  { %4137 = sst [smem:[#allocation23_spill]] %s4113_s12 }
   0x9   :  { %4138 = sst [smem:[#allocation24_spill]] %s4116_s15 }
   0xa   :  { %4139 = sst [smem:[#allocation25_spill]] %s4117_s16 }
   0xb   :  { %4140 = sst [smem:[#allocation26_spill]] %s4118_s17 }
   0xc   :  { %4141 = sst [smem:[#allocation27_spill]] %s4119_s18 }
   0xd   :  { %23 = vsyncpa [#allocation4], 0 }
   0xe   :  { %25 = vsyncpa [#allocation4 + $0x1], 0 }
   0xf   :  { %26 = vsyncpa [#allocation7], 0 }
  0x10   :  { %28 = vsyncpa [#allocation7 + $0x1], 0 }
  0x11   :  { %29 = vsyncpa [#allocation5], 0  ;;  %s3513_s27 = smov 0   ;;  %s3515_s28 = smov 0  }
  0x12   :  { %s3517_s29 = smov 0   ;;  %s3519_s30 = smov 0  }
  0x13 LB: > { %4142 = sst [smem:[#allocation13_spill]] %s3395_s29  ;;  %s3532_s0 = sadd.s32 4294967295, %s3399_s30   ;;  %s3399_s30 = sphi %s3519_s30, %s4170_s30   ;;  %s3395_s29 = sphi %s3517_s29, %s4172_s29   ;;  %s3391_s28 = sphi %s3515_s28, %s4174_s28   ;;  %s3387_s27 = sphi %s3513_s27, %s4173_s27  }
  0x14   : > { %s3535_s19 = sadd.s32 1, %s3399_s30   ;;  %s126_s20 = sadd.s32 1, %s3395_s29 }
  0x15   : > { %4143 = sst [smem:[#allocation14_spill]] %s3535_s19  ;;  %s123_s1 = ssub.s32 %s3399_s30, %s3535_s19 }
  0x16   : > { %p124_p0 = scmp.eq.s32.totalorder %s123_s1, 0  ;;  %p133_p1 = scmp.ne.s32.totalorder %s3395_s29, %s3391_s28 }
  0x17   : > { %p134_p2 = scmp.eq.s32.totalorder %s3399_s30, 0  ;;  %p139_p3 = scmp.ne.s32.totalorder %s3391_s28, %s3387_s27 }
  0x18   : > { %s3545_s21 = scalar_select %p124_p0, %s3395_s29, %s126_s20  }
  0x19   : > { %p135_p4 = por %p134_p2, %p133_p1  ;;  %p140_p5 = scmp.eq.s32.totalorder %s3532_s0, 0 }
  0x1a   : > { %4144 = sst [smem:[#allocation15_spill]] %s3545_s21  ;;  %p3044_p6 = scmp.lt.s32.totalorder %s3399_s30, 2 }
  0x1b   : > { %p3549_p7 = por %p140_p5, %p139_p3  ;;  %s3554_s2 = sand.u32 1, %s3395_s29  }
  0x1c   : > { %p3556_p8 = pnand %p3044_p6, %p135_p4  ;;  %s558_s24 = sand.u32 1, %s3399_s30  }
  0x1d   : > { %s4145_s22 = scalar_select %p3549_p7, 1, 0 }
  0x1e   : > { %s2710_s25 = sshll.u32 %s3554_s2, 6  ;;  %s2829_s26 = sshll.u32 %s3399_s30, 10 }
  0x1f   : > { %s562_s27 = scalar_lea.vmem [#allocation6], %s2710_s25  ;;  %s4147_s6 = sld [smem:[#allocation22_spill]] }
  0x20   : > { %s569_s1 = sshll.u32 %s562_s27, 4  ;;  %s3570_s29 = scalar_lea.sflag [#allocation7], %s558_s24  ;;  %s3568_s1 = int_to_ptr.vmem [resolvable:$true] %s569_s1 }
  0x21   : > { %p3576_p10 = pneg %p3556_p8 }
  0x25   : > { %s3566_s19 = scalar_lea.hbm %s4147_s6, %s2829_s26  ;;  %s3246_s26 = scalar_lea.hbm %s4147_s6, 2048 }
  0x26   : > { %s3241_s18 = scalar_lea.hbm %s3566_s19, 1024  ;;  %p3247_p13 = scmp.lt.u32.totalorder %s3566_s19, %s4147_s6 }
  0x27   : > { %p3242_p9 = scmp.ne.s32.totalorder %s3566_s19, %s3241_s18  ;;  %p3248_p0 = scmp.lt.u32.totalorder %s3246_s26, %s3241_s18 }
  0x28   : > { %p3250_p2 = scmp.lt.u32.totalorder %s3241_s18, %s3566_s19 }
  0x29   : > { %p3244_p11 = pnand %p3576_p10, %p3242_p9  ;;  %p3249_p1 = por %p3248_p0, %p3247_p13 }
  0x2b   : > { %p3245_p12 = pneg %p3244_p11  ;;  %p3251_p3 = por %p3250_p2, %p3249_p1 }
  0x2d   : > { %p3252_p4 = pnand %p3251_p3, %p3245_p12 }
  0x2f   : > { %3255 = shalt.err (!%p3252_p4)
}
  0x30   : > { %s3256_s24 = scalar_lea.vmem %s3568_s1, 1024  ;;  %s3401_s21 = smov [#allocation6]  }
  0x31   : > { %p3257_p5 = scmp.ne.s32.totalorder %s3568_s1, %s3256_s24  ;;  %s3261_s25 = sshll.u32 %s3401_s21, 4  ;;  %s3262_s25 = int_to_ptr.vmem [resolvable:$false] %s3261_s25 }
  0x32   : > { %s3263_s27 = scalar_lea.vmem %s3262_s25, 2048  ;;  %p3264_p11 = scmp.lt.s32.totalorder %s3568_s1, %s3262_s25 }
  0x33   : > { %p3259_p6 = pnand %p3257_p5, %p3576_p10  ;;  %p3265_p7 = scmp.lt.s32.totalorder %s3263_s27, %s3256_s24 }
  0x35   : > { %p3260_p9 = pneg %p3259_p6  ;;  %p3266_p13 = por %p3265_p7, %p3264_p11 }
  0x37   : > { %p3267_p0 = pnand %p3266_p13, %p3260_p9 }
  0x39   : > { %3270 = shalt.err (!%p3267_p0)
}
  0x3a   : > { %s4128_s18 = smov 64   ;;  %s4129_s26 = smov 4  }
  0x3b   : > { %3040 = dma.hbm_to_vmem [thread:$0]  (!%p3556_p8), %s3566_s19, 1024, %s3568_s1, %s3570_s29, %s4128_s18, %s4128_s18, %s4129_s26  }
  0x3c   : > { %p2716_p7 = scmp.ge.s32.totalorder %s3399_s30, 1  ;;  %p649_p12 = scmp.lt.s32.totalorder %s3399_s30, 3 }
  0x3d   : > { %s3020_s20 = smul.u32 192, %s3554_s2  ;;  %s4150_s4 = sld [smem:[#allocation20_spill]] }
  0x3e   : > { %p3606_p1 = pnand %p2716_p7, %p649_p12  ;;  %s3021_s21 = smul.u32 3072, %s3399_s30 }
  0x3f   : > { %s534_s16 = scalar_lea.vmem [#allocation3], %s3020_s20  ;;  %s531_s19 = scalar_lea.sflag [#allocation4], %s3554_s2 }
  0x40   : > { %s4149_s24 = scalar_select %p3606_p1, 1, 0 }
  0x41   : > { %s541_s3 = sshll.u32 %s534_s16, 4  ;;  %s3616_s3 = int_to_ptr.vmem [resolvable:$true] %s541_s3 }
  0x43   : > { %s3614_s6 = scalar_lea.hbm %s4150_s4, %s3021_s21  ;;  %s3276_s25 = scalar_lea.hbm %s4150_s4, 6144 }
  0x44   : > { %s3271_s1 = scalar_lea.hbm %s3614_s6, 3072  ;;  %p3277_p5 = scmp.lt.u32.totalorder %s3614_s6, %s4150_s4 }
  0x45   : > { %p3272_p2 = scmp.ne.s32.totalorder %s3614_s6, %s3271_s1  ;;  %p3278_p6 = scmp.lt.u32.totalorder %s3276_s25, %s3271_s1 }
  0x46   : > { %p3280_p11 = scmp.lt.u32.totalorder %s3271_s1, %s3614_s6 }
  0x47   : > { %p3274_p3 = pnand %p3272_p2, %p3576_p10  ;;  %p3279_p9 = por %p3278_p6, %p3277_p5 }
  0x49   : > { %p3275_p4 = pneg %p3274_p3  ;;  %p3281_p13 = por %p3280_p11, %p3279_p9 }
  0x4b   : > { %p3282_p0 = pnand %p3281_p13, %p3275_p4 }
  0x4d   : > { %3285 = shalt.err (!%p3282_p0)
}
  0x4e   : > { %s3286_s16 = scalar_lea.vmem %s3616_s3, 3072  ;;  %s3404_s18 = smov [#allocation3]  }
  0x4f   : > { %p3287_p7 = scmp.ne.s32.totalorder %s3616_s3, %s3286_s16  ;;  %s3291_s26 = sshll.u32 %s3404_s18, 4  ;;  %s3292_s26 = int_to_ptr.vmem [resolvable:$false] %s3291_s26 }
  0x50   : > { %s3293_s20 = scalar_lea.vmem %s3292_s26, 6144  ;;  %p3294_p3 = scmp.lt.s32.totalorder %s3616_s3, %s3292_s26 }
  0x51   : > { %p3289_p12 = pnand %p3287_p7, %p3576_p10  ;;  %p3295_p1 = scmp.lt.s32.totalorder %s3293_s20, %s3286_s16 }
  0x53   : > { %p3290_p2 = pneg %p3289_p12  ;;  %p3296_p5 = por %p3295_p1, %p3294_p3 }
  0x55   : > { %p3297_p6 = pnand %p3296_p5, %p3290_p2 }
  0x57   : > { %3300 = shalt.err (!%p3297_p6)
}
  0x58   : > { %s3405_s1 = smov 192   ;;  %s3406_s25 = smov 12  }
  0x59   : > { %3037 = dma.hbm_to_vmem [thread:$0]  (!%p3556_p8), %s3614_s6, 3072, %s3616_s3, %s531_s19, %s3405_s1, %s3405_s1, %s3406_s25  }
  0x5a   : > { %s2713_s21 = sshll.u32 %s3554_s2, 7  ;;  %s2830_s27 = sshll.u32 %s3399_s30, 11 }
  0x5b   : > { %s4151_s12 = sld [smem:[#allocation23_spill]]  ;;  %s616_s20 = scalar_lea.vmem [#allocation8], %s2713_s21 }
  0x5c   : > { %s623_s4 = sshll.u32 %s616_s20, 4  ;;  %s3649_s4 = int_to_ptr.vmem [resolvable:$true] %s623_s4 }
  0x61   : > { %s3647_s16 = scalar_lea.hbm %s4151_s12, %s2830_s27  ;;  %s3306_s30 = scalar_lea.hbm %s4151_s12, 4096 }
  0x62   : > { %s3301_s15 = scalar_lea.hbm %s3647_s16, 2048  ;;  %p3307_p11 = scmp.lt.u32.totalorder %s3647_s16, %s4151_s12 }
  0x63   : > { %p3302_p1 = scmp.ne.s32.totalorder %s3647_s16, %s3301_s15  ;;  %p3308_p13 = scmp.lt.u32.totalorder %s3306_s30, %s3301_s15 }
  0x64   : > { %p3310_p7 = scmp.lt.u32.totalorder %s3301_s15, %s3647_s16 }
  0x65   : > { %p3304_p4 = pnand %p3302_p1, %p3576_p10  ;;  %p3309_p0 = por %p3308_p13, %p3307_p11 }
  0x67   : > { %p3305_p9 = pneg %p3304_p4  ;;  %p3311_p12 = por %p3310_p7, %p3309_p0 }
  0x69   : > { %p3312_p2 = pnand %p3311_p12, %p3305_p9 }
  0x6b   : > { %3315 = shalt.err (!%p3312_p2)
}
  0x6c   : > { %s3316_s1 = scalar_lea.vmem %s3649_s4, 2048  ;;  %s3407_s25 = smov [#allocation8]  }
  0x6d   : > { %p3317_p3 = scmp.ne.s32.totalorder %s3649_s4, %s3316_s1  ;;  %s3321_s21 = sshll.u32 %s3407_s25, 4  ;;  %s3322_s21 = int_to_ptr.vmem [resolvable:$false] %s3321_s21 }
  0x6e   : > { %s3323_s27 = scalar_lea.vmem %s3322_s21, 4096  ;;  %p3324_p1 = scmp.lt.s32.totalorder %s3649_s4, %s3322_s21 }
  0x6f   : > { %p3319_p5 = pnand %p3317_p3, %p3576_p10  ;;  %p3325_p4 = scmp.lt.s32.totalorder %s3323_s27, %s3316_s1 }
  0x71   : > { %p3320_p6 = pneg %p3319_p5  ;;  %p3326_p11 = por %p3325_p4, %p3324_p1 }
  0x73   : > { %p3327_p13 = pnand %p3326_p11, %p3320_p6 }
  0x75   : > { %3330 = shalt.err (!%p3327_p13)
}
  0x76   : > { %s4152_s15 = smov 4   ;;  %s4153_s18 = smov 64  }
  0x77   : > { %3043 = dma.hbm_to_vmem [thread:$0]  (!%p3556_p8), %s3647_s16, 2048, %s3649_s4, %s3570_s29, %s4153_s18, %s4153_s18, %s4152_s15  }
  0x78   : > { %p4154_p10 = scmp.ne.s32.totalorder %s4149_s24, 0 }
  0x79   : > { %s655_s17 = sand.u32 (!%p4154_p10), 1, %s3391_s28   ;;  %p4155_p9 = scmp.ne.s32.totalorder (!%p4154_p10), %s4145_s22, 0 }
  0x7a   : > { %653 = sbr.rel (%p4154_p10) target bundleno = 3407 (0xd4f), region = 92  ;;  %s656_s20 = scalar_lea.sflag (!%p4154_p10), [#allocation4], %s655_s17 }
  0x7b   : > { %s3022_s26 = smul.u32 (!%p4154_p10), 192, %s655_s17 }
  0x7d   : > { %s3679_s3 = scalar_lea.vmem (!%p4154_p10), [#allocation3], %s3022_s26 }
  0x81   : > { %3374 = dma.done.wait (%p4155_p9), %s656_s20, 3072  }
  0x82   : > { %3376 = vsyncadd (%p4155_p9), %s656_s20, 4294964224  ;;  %s664_s23 = sand.u32 1, %s3532_s0   ;;  %s2717_s6 = sshll.u32 %s655_s17, 6 }
  0x83   : > { %s665_s4 = scalar_lea.sflag [#allocation7], %s664_s23  ;;  %s3686_s29 = scalar_lea.vmem [#allocation6], %s2717_s6 }
  0x84   : > { %3378 = dma.done.wait (%p4155_p9), %s665_s4, 3072  }
  0x85   : > { %3380 = vsyncadd (%p4155_p9), %s665_s4, 4294964224  ;;  %s2718_s24 = sshll.u32 %s655_s17, 7  ;;  %p766_p8 = scmp.lt.s32.totalorder %s3532_s0, 1 }
  0x86   : > { %s4156_s5 = sld [smem:[#allocation21_spill]]  ;;  %p2722_p0 = scmp.ne.s32.totalorder %s3532_s0, 0 }
  0x87   : > { %s3694_s16 = scalar_select %p766_p8, %s3532_s0, 1 }
  0x88   : > { %s4159_s21 = sld [smem:[#allocation18_spill]] (!%p2722_p0)  ;;  %s4160_s17 = sld [smem:[#allocation19_spill]] (!%p2722_p0) }
  0x89   : > { %s3023_s30 = smul.u32 3, %s3694_s16  ;;  %s2831_s23 = sshll.u32 %s3694_s16, 7 }
  0x8a   : > { %s3718_s12 = scalar_lea.vmem %s4111_s10, %s2831_s23  ;;  %s2721_s2 = sshll.u32 %s3694_s16, 1 }
  0x8b   : > { %s3724_s1 = scalar_lea.vmem %s4112_s11, %s2721_s2  ;;  %s790_s15 = scalar_lea.vmem %s4114_s13, %s3694_s16 }
  0x8c   : > { %s3712_s20 = scalar_lea.vmem %s4156_s5, %s3023_s30  ;;  %s793_s30 = scalar_lea.vmem %s4115_s14, %s3694_s16 }
  0x8d   : > { %s4157_s5 = sld [smem:[#allocation24_spill]]  ;;  %s3738_s23 = scalar_lea.vmem [#allocation8], %s2718_s24 }
  0x8e   : > { %801 = sbr.rel (%p2722_p0) target bundleno = 465 (0x1d1), region = 108  ;;  %s4158_s2 = sld [smem:[#allocation16_spill]] (!%p2722_p0)  ;;  %v2723_v17 = vld [vmem:[%s4159_s21] ss:$0 sm:$0xff] (!%p2722_p0) }
  0x8f   : > { %v2724_v19 = vld [vmem:[%s4160_s17] ss:$0 sm:$0xff] (!%p2722_p0) }
  0x93   : > { %s796_s6 = scalar_lea.vmem %s4157_s5, %s3694_s16 }
  0x94   : > { %v802_v0 = vld [vmem:[%s4158_s2] sm:$0xff] (!%p2722_p0)  ;;  %v803_v1 = vld [vmem:[%s4158_s2 + $0x8] sm:$0xff] (!%p2722_p0) }
  0x95   : > { %806 = vadd.xlane.f32.xlu0 %v802_v0 }
  0x99   : > { %808 = vadd.xlane.f32.xlu0 %v803_v1 }
 0x122   : > { %v807_v2 = vpop.xlane.xlu0 %806 }
 0x123   : > { %v811_v3 = vmul.f32 0.0078125, %v807_v2 }
 0x125   : > { %v813_v4 = vsub.f32 %v802_v0, %v811_v3 }
 0x126   : > { %v809_v5 = vpop.xlane.xlu0 %808 }
 0x127   : > { %v812_v6 = vmul.f32 0.0078125, %v809_v5  ;;  %v815_v7 = vmul.f32 %v813_v4, %v813_v4 }
 0x129   : > { %v814_v8 = vsub.f32 %v803_v1, %v812_v6  ;;  %817 = vadd.xlane.f32.xlu1 %v815_v7 }
 0x12b   : > { %v816_v9 = vmul.f32 %v814_v8, %v814_v8 }
 0x12d   : > { %819 = vadd.xlane.f32.xlu1 %v816_v9 }
 0x1b6   : > { %v818_v10 = vpop.xlane.xlu1 %817 }
 0x1b7   : > { %v821_v11 = vmul.f32 0.0078125, %v818_v10 }
 0x1b9   : > { %v823_v12 = vadd.f32 1e-12, %v821_v11 }
 0x1ba   : > { %v820_v13 = vpop.xlane.xlu1 %819 }
 0x1bb   : > { %3093 = vrsqrt.f32 %v823_v12  ;;  %v822_v14 = vmul.f32 0.0078125, %v820_v13 }
 0x1bd   : > { %v824_v15 = vadd.f32 1e-12, %v822_v14 }
 0x1bf   : > { %3095 = vrsqrt.f32 %v824_v15 }
 0x1c5   : > { %v3094_v16 = vpop.eup %3093 }
 0x1c6   : > { %v827_v18 = vmul.f32 %v3094_v16, %v813_v4 }
 0x1c8   : > { %v835_v20 = vmul.f32 %v2723_v17, %v827_v18 }
 0x1c9   : > { %v3096_v21 = vpop.eup %3095 }
 0x1ca   : > { %v843_v22 = vadd.f32 %v2724_v19, %v835_v20  ;;  %v828_v23 = vmul.f32 %v3096_v21, %v814_v8 }
 0x1cc   : > { %845 = vst [vmem:[#allocation2] sm:$0xff] %v843_v22  ;;  %v836_v24 = vmul.f32 %v2723_v17, %v828_v23 }
 0x1ce   : > { %v844_v25 = vadd.f32 %v2724_v19, %v836_v24 }
 0x1d0   : > { %846 = vst [vmem:[#allocation2 + $0x8] sm:$0xff] %v844_v25 }
 0x1d1 PF: > { %v3097_v26 = vld [vmem:[%s3679_s3 + $0x4] ss:$12 sps:$4 sm:$0xff]   ;;  %v3099_v27 = vld [vmem:[%s3679_s3] ss:$12 sps:$4 sm:$0xff]   ;;  %v3408_v28 = vmov 0   ;;  %v3409_v46 = vmov 0.0   ;;  %v884_v55 = vlaneseq  ;;  %s4162_s21 = scalar_lea.vmem %s4108_s7, %s3694_s16 }
 0x1d2   : > { %1059 = vmatprep.mubr.bf16.mxu0 %v3408_v28  ;;  %1027 = vmatprep.subr.bf16.mxu0 %v3097_v26  ;;  %v3100_v29 = vld [vmem:[%s3679_s3 + $0x1c] ss:$12 sps:$4 sm:$0xff]   ;;  %v3102_v30 = vld [vmem:[%s3679_s3 + $0x18] ss:$12 sps:$4 sm:$0xff]   ;;  %v3103_v31 = vld [vmem:[%s3679_s3 + $0x34] ss:$12 sps:$4 sm:$0xff]  }
 0x1d3   : > { %1028 = vmatpush1.bf16.msra.mxu0 %v3099_v27  ;;  %v3105_v32 = vld [vmem:[%s3679_s3 + $0x30] ss:$12 sps:$4 sm:$0xff]   ;;  %v3106_v33 = vld [vmem:[%s3679_s3 + $0x4c] ss:$12 sps:$4 sm:$0xff]   ;;  %v3108_v34 = vld [vmem:[%s3679_s3 + $0x48] ss:$12 sps:$4 sm:$0xff]   ;;  %2900 = vmatprep.subr.bf16.mxu1 %v3409_v46 }
 0x1d4   : > { %1029 = vmatprep.subr.bf16.mxu0 %v3100_v29  ;;  %v3109_v35 = vld [vmem:[%s3679_s3 + $0x64] ss:$12 sps:$4 sm:$0xff]   ;;  %v3111_v36 = vld [vmem:[%s3679_s3 + $0x60] ss:$12 sps:$4 sm:$0xff]   ;;  %v3112_v37 = vld [vmem:[%s3679_s3 + $0x7c] ss:$12 sps:$4 sm:$0xff]  }
 0x1d5   : > { %v3114_v38 = vld [vmem:[%s3679_s3 + $0x78] ss:$12 sps:$4 sm:$0xff]   ;;  %v3115_v39 = vld [vmem:[%s3679_s3 + $0x94] ss:$12 sps:$4 sm:$0xff]   ;;  %v3117_v40 = vld [vmem:[%s3679_s3 + $0x90] ss:$12 sps:$4 sm:$0xff]  }
 0x1d6   : > { %v3118_v41 = vld [vmem:[%s3679_s3 + $0xac] ss:$12 sps:$4 sm:$0xff]   ;;  %v3120_v42 = vld [vmem:[%s3679_s3 + $0xa8] ss:$12 sps:$4 sm:$0xff]   ;;  %vm3410_vm0 = vmmov 0   ;;  %v3800_v56 = vshrl.u32 %v884_v55, 7 }
 0x1d7   : > { %1030 = vmatpush1.bf16.msra.mxu0 %v3102_v30  ;;  %v3770_v43 = vld [vmem:[#allocation2] sm:$0xff]  ;;  %v3772_v44 = vld [vmem:[#allocation2 + $0x8] sm:$0xff]  ;;  %2916 = vmatprep.mubr.msk.bf16.mxu1 %vm3410_vm0, %v3409_v46  ;;  %v3122_v48 = vld [vmem:[%s3679_s3 + $0x20] ss:$12 sps:$4 sm:$0xff]   ;;  %vm1114_vm1 = vcmask 261120   ;;  %s3413_s26 = smov 32  }
 0x1d8   : > { %1031 = vmatprep.subr.bf16.mxu0 %v3103_v31  ;;  %v849_v45 = vpack.c.bf16 %v3772_v44, %v3770_v43  ;;  %v3121_v47 = vld [vmem:[%s3679_s3 + $0x8] ss:$12 sps:$4 sm:$0xff]   ;;  %v3123_v49 = vld [vmem:[%s3679_s3 + $0x38] ss:$12 sps:$4 sm:$0xff]   ;;  %v3124_v50 = vld [vmem:[%s3679_s3 + $0x50] ss:$12 sps:$4 sm:$0xff]  }
 0x1d9   : > { %2901 = vmatpush3.bf16.msra.mxu1 %v3121_v47  ;;  %v3125_v51 = vld [vmem:[%s3679_s3 + $0x68] ss:$12 sps:$4 sm:$0xff]   ;;  %v3126_v52 = vld [vmem:[%s3679_s3 + $0x80] ss:$12 sps:$4 sm:$0xff]   ;;  %v3127_v53 = vld [vmem:[%s3679_s3 + $0x98] ss:$12 sps:$4 sm:$0xff]  }
 0x1da   : > { %2902 = vmatprep.subr.bf16.mxu1 %v3409_v46  ;;  %v3128_v54 = vld [vmem:[%s3679_s3 + $0xb0] ss:$12 sps:$4 sm:$0xff]   ;;  %v886_v57 = vsub.s32 0, %v3800_v56  ;;  %v890_v59 = vsub.s32 1, %v3800_v56  ;;  %s3411_s3 = smov 64   ;;  %v894_v14 = vsub.s32 2, %v3800_v56 }
 0x1db   : > { %1032 = vmatpush1.bf16.msra.mxu0 %v3105_v32  ;;  %v882_v58 = vld [vmem:[%s3712_s20] sm:$0x7]  ;;  %s3412_s20 = smov 96   ;;  %s4161_s19 = sld [smem:[#allocation17_spill]]  ;;  %vm1333_vm2 = vcmask 130048  }
 0x1dc   : > { %1033 = vmatprep.subr.bf16.mxu0 %v3106_v33  ;;  %v887_v60 = vrot.slane %v882_v58, %v886_v57  ;;  %v891_v62 = vrot.slane %v882_v58, %v890_v59  ;;  %v895_v17 = vrot.slane %v882_v58, %v894_v14  ;;  %p2815_p7 = scmp.ne.s32.totalorder %s3532_s0, 1 }
 0x1dd   : > { %2903 = vmatpush3.bf16.msra.mxu1 %v3122_v48  ;;  %vm3416_vm7 = vmmov (!%p2815_p7), 0   ;;  %vm2401_vm8 = vcmask (!%p2815_p7), 1040384   ;;  %s4168_s24 = sld [smem:[#allocation26_spill]] (!%p2815_p7) }
 0x1de   : > { %2904 = vmatprep.subr.bf16.mxu1 %v3409_v46 }
 0x1df   : > { %1034 = vmatpush1.bf16.msra.mxu0 %v3108_v34 }
 0x1e0   : > { %1035 = vmatprep.subr.bf16.mxu0 %v3109_v35 }
 0x1e1   : > { %2905 = vmatpush3.bf16.msra.mxu1 %v3123_v49  ;;  %v1319_v32 = vld [vmem:[%s4161_s19 + $0x10] sm:$0xff]  ;;  %v1320_v35 = vld [vmem:[%s4161_s19 + $0x18] sm:$0xff]  ;;  %v1322_v14 = vld [vmem:[%s4161_s19 + $0x28] sm:$0xff] }
 0x1e2   : > { %2906 = vmatprep.subr.bf16.mxu1 %v3409_v46 }
 0x1e3   : > { %1036 = vmatpush1.bf16.msra.mxu0 %v3111_v36 }
 0x1e4   : > { %1037 = vmatprep.subr.bf16.mxu0 %v3112_v37 }
 0x1e5   : > { %2907 = vmatpush3.bf16.msra.mxu1 %v3124_v50 }
 0x1e6   : > { %2908 = vmatprep.subr.bf16.mxu1 %v3409_v46 }
 0x1e7   : > { %1038 = vmatpush1.bf16.msra.mxu0 %v3114_v38 }
 0x1e8   : > { %1039 = vmatprep.subr.bf16.mxu0 %v3115_v39 }
 0x1e9   : > { %2909 = vmatpush3.bf16.msra.mxu1 %v3125_v51 }
 0x1ea   : > { %2910 = vmatprep.subr.bf16.mxu1 %v3409_v46 }
 0x1eb   : > { %1040 = vmatpush1.bf16.msra.mxu0 %v3117_v40 }
 0x1ec   : > { %1041 = vmatprep.subr.bf16.mxu0 %v3118_v41 }
 0x1ed   : > { %2911 = vmatpush3.bf16.msra.mxu1 %v3126_v52 }
 0x1ee   : > { %2912 = vmatprep.subr.bf16.mxu1 %v3409_v46 }
 0x1ef   : > { %1042 = vmatpush1.bf16.msra.mxu0 %v3120_v42 }
 0x1f0   : > { %2920 = vmatprep.subr.bf16.mxu0 %v3409_v46 }
 0x1f1   : > { %2913 = vmatpush3.bf16.msra.mxu1 %v3127_v53  ;;  %v1323_v53 = vld [vmem:[%s4161_s19 + $0x30] sm:$0xff] }
 0x1f2   : > { %1060 = vmatmul.mubr.bf16.vlgmr.msra.gmra.mrb[0].mxu0 %v849_v45  ;;  %2914 = vmatprep.subr.bf16.mxu1 %v3409_v46 }
 0x1f3   : > { %2922 = vmatprep.mubr.msk.bf16.mxu0 %vm3410_vm0, %v3409_v46 }
 0x1f5   : > { %2915 = vmatpush3.bf16.msra.mxu1 %v3128_v54 }
 0x1f6   : > { %2926 = vmatprep.subr.bf16.mxu1 %v3409_v46 }
 0x1f8   : > { %2917 = vmatmul.mubr.bf16.vlgmr.msra.gmra.mrb[0].mxu1 %v849_v45 }
 0x1f9   : > { %2928 = vmatprep.mubr.msk.bf16.mxu1 %vm3410_vm0, %v3409_v46 }
 0x2c5   : > { %v1061_v61 = vpop.f32.mrb[0].mxu0 }
 0x2c6   : > { %v1063_v63 = vpop.f32.mrb[1].mxu0  ;;  %v1062_v1 = vadd.f32 %v1061_v61, %v887_v60 }
 0x2c7   : > { %v1065_v0 = vpop.f32.mrb[2].mxu0  ;;  %v1064_v4 = vadd.f32 %v1063_v63, %v891_v62 }
 0x2c8   : > { %v1066_v2 = vadd.f32 %v1065_v0, %v887_v60  ;;  %v1067_v3 = vpop.f32.mrb[3].mxu0 }
 0x2c9   : > { %v1068_v5 = vadd.f32 %v1067_v3, %v891_v62 }
 0x2ca   : > { %v1111_v6 = vpack.c.bf16 %v1066_v2, %v1062_v1 }
 0x2cb   : > { %v1112_v7 = vpack.c.bf16 %v1068_v5, %v1064_v4  ;;  %v1104_v19 = vpop.f32.mrb[0].mxu1  ;;  %v1317_v5 = vld [vmem:[%s4161_s19] sm:$0xff] }
 0x2cc   : > { %v1105_v20 = vadd.f32 %v1104_v19, %v895_v17  ;;  %v2918_v21 = vpop.f32.mrb[1].mxu1 }
 0x2cd   : > { %1217 = vrot.lane.b32.xlu1 %v1112_v7, %s3411_s3  ;;  %1166 = vrot.lane.b32.xlu0 %v1112_v7, %s3412_s20  ;;  %v1119_v8 = vsel %vm1114_vm1, %v1112_v7, 0  ;;  %v1107_v22 = vpop.f32.mrb[2].mxu1 }
 0x2ce   : > { %2921 = vmatpush3.bf16.xpose.msra.mxu0 %v1119_v8  ;;  %v1108_v23 = vadd.f32 %v1107_v22, %v895_v17  ;;  %v2919_v24 = vpop.f32.mrb[3].mxu1  ;;  %v1318_v8 = vld [vmem:[%s4161_s19 + $0x8] sm:$0xff]  ;;  %v1324_v17 = vld [vmem:[%s4161_s19 + $0x38] sm:$0xff] }
 0x2cf   : > { %2932 = vmatprep.subr.bf16.mxu0 %v3409_v46 }
 0x2d0   : > { %v3833_v26 = vpack.c.bf16 %v1108_v23, %v1105_v20 }
 0x2d1   : > { %1215 = vrot.lane.b32.xlu1 %v1111_v6, %s3411_s3  ;;  %1163 = vrot.lane.b32.xlu0 %v1111_v6, %s3412_s20 }
 0x2d5   : > { %1266 = vrot.lane.b32.xlu1 %v1111_v6, %s3413_s26  ;;  %1268 = vrot.lane.b32.xlu0 %v1112_v7, %s3413_s26 }
 0x2d6   : > { %2923 = vmatmul.mubr.msk.bf16.vlgmr.msra.gmra.mrb[4].mxu0 %vm1114_vm1, %v1111_v6 }
 0x2d7   : > { %2934 = vmatprep.mubr.msk.bf16.mxu0 %vm3410_vm0, %v3409_v46 }
 0x33f   : > { %v1218_v9 = vpop.permute.xlu1 %1217  ;;  %v1167_v10 = vpop.permute.xlu0 %1166 }
 0x340   : > { %v1223_v11 = vsel %vm1114_vm1, %v1218_v9, 0  ;;  %v1172_v12 = vsel %vm1114_vm1, %v1167_v10, 0 }
 0x341   : > { %2927 = vmatpush3.bf16.xpose.msra.mxu1 %v1172_v12  ;;  %2933 = vmatpush3.bf16.xpose.msra.mxu0 %v1223_v11  ;;  %v1321_v11 = vld [vmem:[%s4161_s19 + $0x20] sm:$0xff] }
 0x342   : > { %2938 = vmatprep.subr.bf16.mxu1 %v3409_v46  ;;  %2944 = vmatprep.subr.bf16.mxu0 %v3409_v46 }
 0x343   : > { %v1164_v13 = vpop.permute.xlu0 %1163  ;;  %v1216_v15 = vpop.permute.xlu1 %1215 }
 0x347   : > { %v1269_v16 = vpop.permute.xlu0 %1268  ;;  %v1267_v25 = vpop.permute.xlu1 %1266 }
 0x348   : > { %v1274_v18 = vsel %vm1114_vm1, %v1269_v16, 0  ;;  %2929 = vmatmul.mubr.msk.bf16.vlgmr.msra.gmra.mrb[4].mxu1 %vm1114_vm1, %v1164_v13  ;;  %2935 = vmatmul.mubr.msk.bf16.vlgmr.msra.gmra.mrb[8].mxu0 %vm1114_vm1, %v1216_v15 }
 0x349   : > { %2939 = vmatpush3.bf16.xpose.msra.mxu1 %v1274_v18  ;;  %2940 = vmatprep.mubr.msk.bf16.mxu1 %vm3410_vm0, %v3409_v46 }
 0x34a   : > { %2950 = vmatprep.subr.bf16.mxu1 %v3409_v46  ;;  %2946 = vmatprep.mubr.msk.bf16.mxu0 %vm3410_vm0, %v3409_v46 }
 0x34b   : > { %2945 = vmatpush3.bf16.msra.mxu0 %v3833_v26 }
 0x34c   : > { %2956 = vmatprep.subr.bf16.mxu0 %v3409_v46 }
 0x350   : > { %2941 = vmatmul.mubr.msk.bf16.vlgmr.msra.gmra.mrb[8].mxu1 %vm1114_vm1, %v1267_v25 }
 0x351   : > { %2952 = vmatprep.mubr.msk.bf16.mxu1 %vm3410_vm0, %v3409_v46 }
 0x3a9   : > { %v1155_v27 = vpop.f32.mrb[4].mxu0 }
 0x3aa   : > { %v2924_v29 = vpop.f32.mrb[5].mxu0  ;;  %v1325_v6 = vadd.f32 %v1317_v5, %v1155_v27 }
 0x3ab   : > { %v1158_v30 = vpop.f32.mrb[6].mxu0 }
 0x3ac   : > { %v2925_v31 = vpop.f32.mrb[7].mxu0  ;;  %v1326_v9 = vadd.f32 %v1318_v8, %v1158_v30  ;;  %v1334_v10 = vsel %vm1333_vm2, %v1325_v6, -inf }
 0x3ae   : > { %v1337_v13 = vsel %vm1333_vm2, %v1326_v9, -inf }
 0x41b   : > { %v1208_v33 = vpop.f32.mrb[4].mxu1  ;;  %v1259_v34 = vpop.f32.mrb[8].mxu0 }
 0x41c   : > { %v1327_v36 = vadd.f32 %v1319_v32, %v1208_v33  ;;  %v2930_v37 = vpop.f32.mrb[5].mxu1  ;;  %v2936_v38 = vpop.f32.mrb[9].mxu0  ;;  %v1329_v12 = vadd.f32 %v1321_v11, %v1259_v34  ;;  %v3130_v11 = vld [vmem:[%s3686_s29 + $0x18] sm:$0xff]  }
 0x41d   : > { %v1211_v39 = vpop.f32.mrb[6].mxu1  ;;  %v1262_v40 = vpop.f32.mrb[10].mxu0 }
 0x41e   : > { %v1328_v41 = vadd.f32 %v1320_v35, %v1211_v39  ;;  %v2931_v42 = vpop.f32.mrb[7].mxu1  ;;  %v2937_v45 = vpop.f32.mrb[11].mxu0  ;;  %v1340_v47 = vsel %vm1333_vm2, %v1327_v36, -inf  ;;  %v1330_v15 = vadd.f32 %v1322_v14, %v1262_v40  ;;  %v1346_v16 = vsel %vm1333_vm2, %v1329_v12, -inf }
 0x41f   : > { %1341 = vmax.xlane.f32.xlu0 %v1340_v47 }
 0x420   : > { %v1343_v48 = vsel %vm1333_vm2, %v1328_v41, -inf  ;;  %v1349_v19 = vsel %vm1333_vm2, %v1330_v15, -inf }
 0x421   : > { %1344 = vmax.xlane.f32.xlu1 %v1343_v48 }
 0x423   : > { %v1310_v49 = vpop.f32.mrb[8].mxu1 }
 0x424   : > { %v2942_v50 = vpop.f32.mrb[9].mxu1  ;;  %v3853_v54 = vadd.f32 %v1323_v53, %v1310_v49 }
 0x425   : > { %v1313_v51 = vpop.f32.mrb[10].mxu1 }
 0x426   : > { %v2943_v52 = vpop.f32.mrb[11].mxu1  ;;  %v1352_v55 = vsel %vm1333_vm2, %v3853_v54, -inf  ;;  %v1332_v18 = vadd.f32 %v1324_v17, %v1313_v51 }
 0x428   : > { %v1355_v20 = vsel %vm1333_vm2, %v1332_v18, -inf }
 0x432   : > { %1476 = vrot.lane.b32.xlu1 %v3833_v26, %s3412_s20 }
 0x456   : > { %1353 = vmax.xlane.f32.xlu1 %v1352_v55 }
 0x467   : > { %1750 = vrot.lane.b32.xlu1 %v3833_v26, %s3413_s26  ;;  %s4164_s26 = scalar_lea.vmem %s4110_s9, %s3694_s16 }
 0x4ac   : > { %v1342_v58 = vpop.xlane.xlu0 %1341 }
 0x4ad   : > { %v1360_v60 = vsub.f32 %v1327_v36, %v1342_v58 }
 0x4ae   : > { %v1345_v61 = vpop.xlane.xlu1 %1344 }
 0x4af   : > { %v1370_v62 = vmul.f32 1.442695, %v1360_v60  ;;  %v1361_v63 = vsub.f32 %v1328_v41, %v1345_v61 }
 0x4b1   : > { %3177 = vpow2.f32 %v1370_v62  ;;  %v1372_v0 = vmul.f32 1.442695, %v1361_v63 }
 0x4b2   : > { %v1477_v1 = vpop.permute.xlu1 %1476 }
 0x4b3   : > { %3179 = vpow2.f32 %v1372_v0  ;;  %2951 = vmatpush3.bf16.msra.mxu1 %v1477_v1 }
 0x4b4   : > { %2964 = vmatprep.subr.bf16.mxu1 %v3409_v46 }
 0x4bb   : > { %v3178_v2 = vpop.eup %3177 }
 0x4bc   : > { %v1388_v3 = vsel %vm1333_vm2, %v3178_v2, 0.0 }
 0x4bd   : > { %v3180_v4 = vpop.eup %3179  ;;  %1389 = vadd.xlane.f32.xlu0 %v1388_v3 }
 0x4be   : > { %v1391_v7 = vsel %vm1333_vm2, %v3180_v4, 0.0 }
 0x4c1   : > { %1392 = vadd.xlane.f32.xlu0 %v1391_v7 }
 0x4c5   : > { %1335 = vmax.xlane.f32.xlu0 %v1334_v10 }
 0x4c9   : > { %1338 = vmax.xlane.f32.xlu0 %v1337_v13 }
 0x4cd   : > { %1347 = vmax.xlane.f32.xlu0 %v1346_v16 }
 0x4d1   : > { %1350 = vmax.xlane.f32.xlu0 %v1349_v19 }
 0x4d5   : > { %1356 = vmax.xlane.f32.xlu0 %v1355_v20 }
 0x4e3   : > { %v1354_v33 = vpop.xlane.xlu1 %1353 }
 0x4e4   : > { %v1364_v39 = vsub.f32 %v3853_v54, %v1354_v33 }
 0x4e6   : > { %v1378_v47 = vmul.f32 1.442695, %v1364_v39 }
 0x54a   : > { %v1390_v21 = vpop.xlane.xlu0 %1389 }
 0x54b   : > { %3181 = vrcp.f32 %v1390_v21 }
 0x54e   : > { %v1393_v22 = vpop.xlane.xlu0 %1392 }
 0x54f   : > { %3183 = vrcp.f32 %v1393_v22 }
 0x552   : > { %v1336_v23 = vpop.xlane.xlu0 %1335 }
 0x553   : > { %v1358_v24 = vsub.f32 %v1325_v6, %v1336_v23 }
 0x555   : > { %v1366_v25 = vmul.f32 1.442695, %v1358_v24  ;;  %v3182_v29 = vpop.eup %3181 }
 0x556   : > { %v1339_v27 = vpop.xlane.xlu0 %1338  ;;  %v1416_v34 = vmul.f32 %v3182_v29, %v3178_v2  ;;  %v3131_v2 = vld [vmem:[%s3686_s29] sm:$0xff]   ;;  %v1751_v29 = vpop.permute.xlu1 %1750 }
 0x557   : > { %3185 = vpow2.f32 %v1366_v25  ;;  %v1359_v30 = vsub.f32 %v1326_v9, %v1339_v27  ;;  %v3129_v9 = vld [vmem:[%s3686_s29 + $0x10] sm:$0xff]  }
 0x559   : > { %v3184_v31 = vpop.eup %3183  ;;  %v1368_v32 = vmul.f32 1.442695, %v1359_v30 }
 0x55a   : > { %v1417_v35 = vmul.f32 %v3184_v31, %v3180_v4  ;;  %v1348_v36 = vpop.xlane.xlu0 %1347 }
 0x55b   : > { %3187 = vpow2.f32 %v1368_v32  ;;  %v1362_v37 = vsub.f32 %v1329_v12, %v1348_v36 }
 0x55c   : > { %v1423_v38 = vpack.c.bf16 %v1417_v35, %v1416_v34  ;;  %v3132_v34 = vld [vmem:[%s3686_s29 + $0x8] sm:$0xff]  }
 0x55d   : > { %v1374_v40 = vmul.f32 1.442695, %v1362_v37 }
 0x55e   : > { %2953 = vmatmul.mubr.msk.bf16.vlgmr.msra.gmra.mrb[12].mxu1 %vm1333_vm2, %v1423_v38  ;;  %v1351_v41 = vpop.xlane.xlu0 %1350  ;;  %v3133_v38 = vld [vmem:[%s3686_s29 + $0x20] sm:$0xff]  }
 0x55f   : > { %3189 = vpow2.f32 %v1374_v40  ;;  %v1363_v42 = vsub.f32 %v1330_v15, %v1351_v41  ;;  %2968 = vmatprep.mubr.msk.bf16.mxu1 %vm3410_vm0, %v3409_v46  ;;  %2965 = vmatpush3.bf16.msra.mxu1 %v3131_v2  ;;  %v3134_v41 = vld [vmem:[%s3686_s29 + $0x28] sm:$0xff]  }
 0x560   : > { %2966 = vmatprep.subr.bf16.mxu1 %v3409_v46 }
 0x561   : > { %v3186_v45 = vpop.eup %3185  ;;  %v1376_v48 = vmul.f32 1.442695, %v1363_v42 }
 0x562   : > { %v1357_v49 = vpop.xlane.xlu0 %1356  ;;  %v1382_v50 = vsel %vm1333_vm2, %v3186_v45, 0.0 }
 0x563   : > { %3191 = vpow2.f32 %v1376_v48  ;;  %v1365_v51 = vsub.f32 %v1332_v18, %v1357_v49  ;;  %1383 = vadd.xlane.f32.xlu0 %v1382_v50  ;;  %2967 = vmatpush3.bf16.msra.mxu1 %v3132_v34  ;;  %v3148_v34 = vld [vmem:[%s3718_s12 + $0x34] ss:$8 sps:$4 sm:$0xff]  }
 0x564   : > { %3193 = vpow2.f32 %v1378_v47  ;;  %2978 = vmatprep.subr.bf16.mxu1 %v3409_v46 }
 0x565   : > { %v3188_v52 = vpop.eup %3187  ;;  %v1380_v53 = vmul.f32 1.442695, %v1365_v51  ;;  %v3135_v51 = vld [vmem:[%s3686_s29 + $0x30] sm:$0xff]  }
 0x566   : > { %v1385_v54 = vsel %vm1333_vm2, %v3188_v52, 0.0 }
 0x567   : > { %1386 = vadd.xlane.f32.xlu0 %v1385_v54  ;;  %3195 = vpow2.f32 %v1380_v53  ;;  %v3136_v54 = vld [vmem:[%s3686_s29 + $0x38] sm:$0xff]  }
 0x569   : > { %v3190_v55 = vpop.eup %3189 }
 0x56a   : > { %v1394_v58 = vsel %vm1333_vm2, %v3190_v55, 0.0 }
 0x56b   : > { %1395 = vadd.xlane.f32.xlu0 %v1394_v58 }
 0x56d   : > { %v3192_v60 = vpop.eup %3191 }
 0x56e   : > { %v1397_v61 = vsel %vm1333_vm2, %v3192_v60, 0.0  ;;  %v3194_v62 = vpop.eup %3193 }
 0x56f   : > { %1398 = vadd.xlane.f32.xlu0 %v1397_v61  ;;  %v1400_v63 = vsel %vm1333_vm2, %v3194_v62, 0.0 }
 0x571   : > { %v3196_v0 = vpop.eup %3195 }
 0x572   : > { %v1403_v1 = vsel %vm1333_vm2, %v3196_v0, 0.0 }
 0x573   : > { %1401 = vadd.xlane.f32.xlu0 %v1400_v63 }
 0x577   : > { %1404 = vadd.xlane.f32.xlu0 %v1403_v1 }
 0x58d   : > { %1640 = vrot.lane.b32.xlu0 %v3833_v26, %s3411_s3 }
 0x5f0   : > { %v1384_v3 = vpop.xlane.xlu0 %1383 }
 0x5f1   : > { %3197 = vrcp.f32 %v1384_v3 }
 0x5f4   : > { %v1387_v4 = vpop.xlane.xlu0 %1386 }
 0x5f5   : > { %3199 = vrcp.f32 %v1387_v4 }
 0x5f8   : > { %v1396_v26 = vpop.xlane.xlu0 %1395 }
 0x5fb   : > { %v3198_v5 = vpop.eup %3197 }
 0x5fc   : > { %v1414_v7 = vmul.f32 %v3198_v5, %v3186_v45  ;;  %v1399_v12 = vpop.xlane.xlu0 %1398 }
 0x5fd   : > { %3201 = vrcp.f32 %v1399_v12 }
 0x5fe   : > { %3203 = vrcp.f32 %v1396_v26 }
 0x5ff   : > { %v3200_v6 = vpop.eup %3199 }
 0x600   : > { %v1415_v8 = vmul.f32 %v3200_v6, %v3188_v52  ;;  %v1402_v13 = vpop.xlane.xlu0 %1401 }
 0x602   : > { %v1422_v10 = vpack.c.bf16 %v1415_v8, %v1414_v7 }
 0x604   : > { %2947 = vmatmul.mubr.msk.bf16.vlgmr.msra.gmra.mrb[12].mxu0 %vm1333_vm2, %v1422_v10  ;;  %v1405_v14 = vpop.xlane.xlu0 %1404 }
 0x605   : > { %2957 = vmatpush3.bf16.msra.mxu0 %v3129_v9  ;;  %2960 = vmatprep.mubr.msk.bf16.mxu0 %vm3410_vm0, %v3409_v46  ;;  %3205 = vrcp.f32 %v1405_v14 }
 0x606   : > { %2958 = vmatprep.subr.bf16.mxu0 %v3409_v46  ;;  %3207 = vrcp.f32 %v1402_v13 }
 0x607   : > { %v3202_v20 = vpop.eup %3201 }
 0x608   : > { %v1641_v21 = vpop.permute.xlu0 %1640  ;;  %v3204_v22 = vpop.eup %3203  ;;  %v1419_v23 = vmul.f32 %v3202_v20, %v3192_v60  ;;  %v3137_v20 = vld [vmem:[%s3718_s12] ss:$8 sps:$4 sm:$0xff]  }
 0x609   : > { %2959 = vmatpush3.bf16.msra.mxu0 %v3130_v11  ;;  %v1418_v24 = vmul.f32 %v3204_v22, %v3190_v55  ;;  %v2769_v11 = vld [vmem:[%s4162_s21] ss:$0 sm:$0xff]  ;;  %v3142_v22 = vld [vmem:[%s3718_s12 + $0x14] ss:$8 sps:$4 sm:$0xff]  }
 0x60a   : > { %2972 = vmatprep.subr.bf16.mxu0 %v3409_v46 }
 0x60b   : > { %v1424_v25 = vpack.c.bf16 %v1419_v23, %v1418_v24  ;;  %v3140_v23 = vld [vmem:[%s3718_s12 + $0x10] ss:$8 sps:$4 sm:$0xff]  }
 0x60f   : > { %v3206_v27 = vpop.eup %3205 }
 0x610   : > { %v3208_v30 = vpop.eup %3207  ;;  %v1421_v31 = vmul.f32 %v3206_v27, %v3196_v0 }
 0x611   : > { %v1420_v32 = vmul.f32 %v3208_v30, %v3194_v62 }
 0x613   : > { %v1425_v33 = vpack.c.bf16 %v1421_v31, %v1420_v32  ;;  %v3145_v32 = vld [vmem:[%s3718_s12 + $0x24] ss:$8 sps:$4 sm:$0xff]  }
 0x631   : > { %v1516_v15 = vpop.f32.mrb[12].mxu1 }
 0x632   : > { %v2954_v16 = vpop.f32.mrb[13].mxu1 }
 0x633   : > { %v1519_v17 = vpop.f32.mrb[14].mxu1 }
 0x634   : > { %v1523_v18 = vpack.c.bf16 %v1519_v17, %v1516_v15  ;;  %v2955_v19 = vpop.f32.mrb[15].mxu1 }
 0x636   : > { %2961 = vmatmul.mubr.msk.bf16.vlgmr.msra.gmra.mrb[16].mxu0 %vm1114_vm1, %v1523_v18 }
 0x637   : > { %2973 = vmatpush3.bf16.msra.mxu0 %v1641_v21  ;;  %2974 = vmatprep.mubr.msk.bf16.mxu0 %vm3410_vm0, %v3409_v46  ;;  %v3139_v21 = vld [vmem:[%s3718_s12 + $0x4] ss:$8 sps:$4 sm:$0xff]  }
 0x638   : > { %2986 = vmatprep.subr.bf16.mxu0 %v3409_v46 }
 0x63e   : > { %2975 = vmatmul.mubr.msk.bf16.vlgmr.msra.gmra.mrb[20].mxu0 %vm1333_vm2, %v1424_v25 }
 0x63f   : > { %2987 = vmatpush3.bf16.msra.mxu0 %v1751_v29  ;;  %2988 = vmatprep.mubr.msk.bf16.mxu0 %vm3410_vm0, %v3409_v46 }
 0x640   : > { %2021 = vmatprep.subr.bf16.mxu0 %v3139_v21 }
 0x646   : > { %2989 = vmatmul.mubr.msk.bf16.vlgmr.msra.gmra.mrb[24].mxu0 %vm1333_vm2, %v1425_v33  ;;  %v3143_v33 = vld [vmem:[%s3718_s12 + $0x20] ss:$8 sps:$4 sm:$0xff]  }
 0x647   : > { %2053 = vmatprep.mubr.bf16.mxu0 %v3408_v28  ;;  %2022 = vmatpush1.bf16.msra.mxu0 %v3137_v20 }
 0x648   : > { %2023 = vmatprep.subr.bf16.mxu0 %v3142_v22 }
 0x64b   : > { %2024 = vmatpush1.bf16.msra.mxu0 %v3140_v23 }
 0x64c   : > { %2025 = vmatprep.subr.bf16.mxu0 %v3145_v32 }
 0x64f   : > { %2026 = vmatpush1.bf16.msra.mxu0 %v3143_v33 }
 0x650   : > { %2027 = vmatprep.subr.bf16.mxu0 %v3148_v34 }
 0x6d7   : > { %v1463_v35 = vpop.f32.mrb[12].mxu0 }
 0x6d8   : > { %v2948_v36 = vpop.f32.mrb[13].mxu0 }
 0x6d9   : > { %v1466_v37 = vpop.f32.mrb[14].mxu0  ;;  %v3151_v36 = vld [vmem:[%s3718_s12 + $0x44] ss:$8 sps:$4 sm:$0xff]  }
 0x6da   : > { %v1470_v39 = vpack.c.bf16 %v1466_v37, %v1463_v35  ;;  %v2949_v40 = vpop.f32.mrb[15].mxu0  ;;  %v3146_v35 = vld [vmem:[%s3718_s12 + $0x30] ss:$8 sps:$4 sm:$0xff]   ;;  %v3149_v37 = vld [vmem:[%s3718_s12 + $0x40] ss:$8 sps:$4 sm:$0xff]  }
 0x6db   : > { %2028 = vmatpush1.bf16.msra.mxu0 %v3146_v35  ;;  %v3157_v40 = vld [vmem:[%s3718_s12 + $0x64] ss:$8 sps:$4 sm:$0xff]  }
 0x6dc   : > { %2969 = vmatmul.mubr.msk.bf16.vlgmr.msra.gmra.mrb[16].mxu1 %vm1114_vm1, %v1470_v39  ;;  %2029 = vmatprep.subr.bf16.mxu0 %v3151_v36  ;;  %v3152_v39 = vld [vmem:[%s3718_s12 + $0x50] ss:$8 sps:$4 sm:$0xff]  }
 0x6dd   : > { %2979 = vmatpush3.bf16.msra.mxu1 %v3133_v38  ;;  %2982 = vmatprep.mubr.msk.bf16.mxu1 %vm3410_vm0, %v3409_v46  ;;  %v3154_v38 = vld [vmem:[%s3718_s12 + $0x54] ss:$8 sps:$4 sm:$0xff]  }
 0x6de   : > { %2980 = vmatprep.subr.bf16.mxu1 %v3409_v46 }
 0x6df   : > { %2030 = vmatpush1.bf16.msra.mxu0 %v3149_v37 }
 0x6e0   : > { %2031 = vmatprep.subr.bf16.mxu0 %v3154_v38 }
 0x6e1   : > { %2981 = vmatpush3.bf16.msra.mxu1 %v3134_v41  ;;  %v3155_v41 = vld [vmem:[%s3718_s12 + $0x60] ss:$8 sps:$4 sm:$0xff]  }
 0x6e2   : > { %2992 = vmatprep.subr.bf16.mxu1 %v3409_v46 }
 0x6e3   : > { %2032 = vmatpush1.bf16.msra.mxu0 %v3152_v39 }
 0x6e4   : > { %2033 = vmatprep.subr.bf16.mxu0 %v3157_v40 }
 0x6e7   : > { %2034 = vmatpush1.bf16.msra.mxu0 %v3155_v41 }
 0x709   : > { %v1577_v28 = vpop.f32.mrb[16].mxu0 }
 0x70a   : > { %v2962_v42 = vpop.f32.mrb[17].mxu0 }
 0x70b   : > { %v1580_v45 = vpop.f32.mrb[18].mxu0  ;;  %v3158_v42 = vld [vmem:[%s3718_s12 + $0x70] ss:$8 sps:$4 sm:$0xff]  }
 0x70c   : > { %v2963_v47 = vpop.f32.mrb[19].mxu0 }
 0x711   : > { %v1680_v48 = vpop.f32.mrb[20].mxu0 }
 0x712   : > { %v2976_v49 = vpop.f32.mrb[21].mxu0 }
 0x713   : > { %v1683_v50 = vpop.f32.mrb[22].mxu0 }
 0x714   : > { %v1687_v52 = vpack.c.bf16 %v1683_v50, %v1680_v48  ;;  %v2977_v53 = vpop.f32.mrb[23].mxu0 }
 0x716   : > { %2983 = vmatmul.mubr.msk.bf16.vlgmr.msra.gmra.mrb[20].mxu1 %vm1114_vm1, %v1687_v52 }
 0x717   : > { %2993 = vmatpush3.bf16.msra.mxu1 %v3135_v51  ;;  %2996 = vmatprep.mubr.msk.bf16.mxu1 %vm3410_vm0, %v3409_v46 }
 0x718   : > { %2994 = vmatprep.subr.bf16.mxu1 %v3409_v46 }
 0x719   : > { %v1790_v55 = vpop.f32.mrb[24].mxu0 }
 0x71a   : > { %v2990_v58 = vpop.f32.mrb[25].mxu0 }
 0x71b   : > { %v1793_v60 = vpop.f32.mrb[26].mxu0  ;;  %2995 = vmatpush3.bf16.msra.mxu1 %v3136_v54 }
 0x71c   : > { %v1797_v61 = vpack.c.bf16 %v1793_v60, %v1790_v55  ;;  %v2991_v62 = vpop.f32.mrb[27].mxu0 }
 0x71e   : > { %2997 = vmatmul.mubr.msk.bf16.vlgmr.msra.gmra.mrb[24].mxu1 %vm1114_vm1, %v1797_v61  ;;  %v2771_v61 = vld [vmem:[%s4164_s26] ss:$0 sm:$0xff] }
 0x7af   : > { %v1633_v63 = vpop.f32.mrb[16].mxu1 }
 0x7b0   : > { %v1634_v0 = vadd.f32 %v1633_v63, %v1577_v28  ;;  %v2970_v1 = vpop.f32.mrb[17].mxu1  ;;  %v3160_v28 = vld [vmem:[%s3718_s12 + $0x74] ss:$8 sps:$4 sm:$0xff]   ;;  %s4163_s12 = scalar_lea.vmem %s4109_s8, %s3694_s16 }
 0x7b1   : > { %v1636_v2 = vpop.f32.mrb[18].mxu1  ;;  %2035 = vmatprep.subr.bf16.mxu0 %v3160_v28  ;;  %v2770_v54 = vld [vmem:[%s4163_s12] ss:$0 sm:$0xff] }
 0x7b2   : > { %v1637_v3 = vadd.f32 %v1636_v2, %v1580_v45  ;;  %v2971_v4 = vpop.f32.mrb[19].mxu1  ;;  %2036 = vmatpush1.bf16.msra.mxu0 %v3158_v42  ;;  %v3161_v2 = vld [vmem:[%s3738_s23 + $0x40] sm:$0xff]  }
 0x7b3   : > { %2869 = vmatprep.subr.bf16.mxu1 %v3161_v2  ;;  %v3163_v4 = vld [vmem:[%s3738_s23 + $0x48] sm:$0xff]  }
 0x7e9   : > { %v1741_v5 = vpop.f32.mrb[20].mxu1 }
 0x7ea   : > { %v1748_v6 = vadd.f32 %v1741_v5, %v1634_v0  ;;  %v2984_v7 = vpop.f32.mrb[21].mxu1  ;;  %v3164_v5 = vld [vmem:[%s3738_s23 + $0x8] sm:$0xff]  }
 0x7eb   : > { %v1744_v8 = vpop.f32.mrb[22].mxu1  ;;  %v3166_v7 = vld [vmem:[%s3738_s23 + $0x10] sm:$0xff]  }
 0x7ec   : > { %v1749_v46 = vadd.f32 %v1744_v8, %v1637_v3  ;;  %v2985_v9 = vpop.f32.mrb[23].mxu1  ;;  %v3162_v3 = vld [vmem:[%s3738_s23] sm:$0xff]   ;;  %v3167_v8 = vld [vmem:[%s3738_s23 + $0x58] sm:$0xff]  }
 0x7ed   : > { %2870 = vmatpush3.bf16.msra.mxu1 %v3162_v3  ;;  %v3169_v9 = vld [vmem:[%s3738_s23 + $0x60] sm:$0xff]  }
 0x7ee   : > { %2871 = vmatprep.subr.bf16.mxu1 %v3163_v4 }
 0x7f1   : > { %v1851_v10 = vpop.f32.mrb[24].mxu1  ;;  %2872 = vmatpush3.bf16.msra.mxu1 %v3164_v5 }
 0x7f2   : > { %v1858_v26 = vadd.f32 %v1851_v10, %v1748_v6  ;;  %v2998_v12 = vpop.f32.mrb[25].mxu1  ;;  %v3165_v6 = vld [vmem:[%s3738_s23 + $0x50] sm:$0xff]   ;;  %v3170_v10 = vld [vmem:[%s3738_s23 + $0x20] sm:$0xff]  }
 0x7f3   : > { %v1854_v13 = vpop.f32.mrb[26].mxu1  ;;  %2873 = vmatprep.subr.bf16.mxu1 %v3165_v6  ;;  %v3173_v12 = vld [vmem:[%s3738_s23 + $0x70] sm:$0xff]  }
 0x7f4   : > { %v1867_v14 = vadd.f32 %v2769_v11, %v1858_v26  ;;  %v1859_v15 = vadd.f32 %v1854_v13, %v1749_v46  ;;  %v2999_v16 = vpop.f32.mrb[27].mxu1  ;;  %v3168_v46 = vld [vmem:[%s3738_s23 + $0x18] sm:$0xff]   ;;  %v3172_v26 = vld [vmem:[%s3738_s23 + $0x28] sm:$0xff]   ;;  %v3174_v13 = vld [vmem:[%s3738_s23 + $0x30] sm:$0xff]  }
 0x7f5   : > { %2874 = vmatpush3.bf16.msra.mxu1 %v3166_v7  ;;  %v1929_v16 = vld [vmem:[%s3724_s1] sm:$0x3] }
 0x7f6   : > { %v1868_v17 = vadd.f32 %v2769_v11, %v1859_v15  ;;  %v1869_v18 = vadd.f32 %v1867_v14, %v3770_v43  ;;  %2875 = vmatprep.subr.bf16.mxu1 %v3167_v8  ;;  %v3171_v11 = vld [vmem:[%s3738_s23 + $0x68] sm:$0xff]   ;;  %v3175_v14 = vld [vmem:[%s3738_s23 + $0x78] sm:$0xff]  }
 0x7f7   : > { %v3176_v15 = vld [vmem:[%s3738_s23 + $0x38] sm:$0xff]  }
 0x7f8   : > { %1873 = vadd.xlane.f32.xlu0 %v1869_v18  ;;  %v1870_v19 = vadd.f32 %v1868_v17, %v3772_v44  ;;  %v1934_v17 = vrot.slane %v1929_v16, %v886_v57 }
 0x7f9   : > { %2876 = vmatpush3.bf16.msra.mxu1 %v3168_v46 }
 0x7fa   : > { %1875 = vadd.xlane.f32.xlu1 %v1870_v19  ;;  %2877 = vmatprep.subr.bf16.mxu1 %v3169_v9 }
 0x7fd   : > { %2878 = vmatpush3.bf16.msra.mxu1 %v3170_v10 }
 0x7fe   : > { %2879 = vmatprep.subr.bf16.mxu1 %v3171_v11 }
 0x801   : > { %2880 = vmatpush3.bf16.msra.mxu1 %v3172_v26 }
 0x802   : > { %2881 = vmatprep.subr.bf16.mxu1 %v3173_v12 }
 0x805   : > { %2882 = vmatpush3.bf16.msra.mxu1 %v3174_v13 }
 0x806   : > { %2883 = vmatprep.subr.bf16.mxu1 %v3175_v14 }
 0x809   : > { %2884 = vmatpush3.bf16.msra.mxu1 %v3176_v15 }
 0x885   : > { %v1874_v24 = vpop.xlane.xlu0 %1873 }
 0x886   : > { %v1878_v25 = vmul.f32 0.0078125, %v1874_v24 }
 0x887   : > { %v1876_v27 = vpop.xlane.xlu1 %1875 }
 0x888   : > { %v1880_v43 = vsub.f32 %v1869_v18, %v1878_v25  ;;  %v1879_v44 = vmul.f32 0.0078125, %v1876_v27  ;;  %v1938_v18 = vrot.slane %v1929_v16, %v890_v59 }
 0x88a   : > { %v1881_v29 = vsub.f32 %v1870_v19, %v1879_v44  ;;  %v1882_v30 = vmul.f32 %v1880_v43, %v1880_v43 }
 0x88c   : > { %1884 = vadd.xlane.f32.xlu0 %v1882_v30  ;;  %v1883_v31 = vmul.f32 %v1881_v29, %v1881_v29 }
 0x890   : > { %1886 = vadd.xlane.f32.xlu0 %v1883_v31 }
 0x919   : > { %v1885_v45 = vpop.xlane.xlu0 %1884 }
 0x91a   : > { %v1888_v47 = vmul.f32 0.0078125, %v1885_v45 }
 0x91c   : > { %v1890_v48 = vadd.f32 1e-12, %v1888_v47 }
 0x91d   : > { %v1887_v49 = vpop.xlane.xlu0 %1886 }
 0x91e   : > { %3209 = vrsqrt.f32 %v1890_v48  ;;  %v1889_v50 = vmul.f32 0.0078125, %v1887_v49 }
 0x920   : > { %v1891_v51 = vadd.f32 1e-12, %v1889_v50 }
 0x922   : > { %3211 = vrsqrt.f32 %v1891_v51 }
 0x928   : > { %v3210_v52 = vpop.eup %3209 }
 0x929   : > { %v1894_v53 = vmul.f32 %v3210_v52, %v1880_v43 }
 0x92b   : > { %v1902_v60 = vmul.f32 %v2770_v54, %v1894_v53 }
 0x92c   : > { %v3212_v55 = vpop.eup %3211 }
 0x92d   : > { %v1895_v58 = vmul.f32 %v3212_v55, %v1881_v29  ;;  %v3961_v63 = vadd.f32 %v2771_v61, %v1902_v60 }
 0x92f   : > { %v1903_v62 = vmul.f32 %v2770_v54, %v1895_v58 }
 0x931   : > { %v3963_v0 = vadd.f32 %v2771_v61, %v1903_v62 }
 0x933   : > { %v1912_v1 = vpack.c.bf16 %v3963_v0, %v3961_v63 }
 0x935   : > { %2054 = vmatmul.mubr.bf16.vlgmr.msra.gmra.mrb[28].mxu0 %v1912_v1 }
 0xa08   : > { %v2055_v19 = vpop.f32.mrb[28].mxu0 }
 0xa09   : > { %v3988_v20 = vadd.f32 %v2055_v19, %v1934_v17  ;;  %v2057_v21 = vpop.f32.mrb[29].mxu0 }
 0xa0a   : > { %v3990_v22 = vadd.f32 %v2057_v21, %v1938_v18  ;;  %v2059_v23 = vpop.f32.mrb[30].mxu0 }
 0xa0b   : > { %v3993_v24 = vmul.f32 0.70710677, %v3988_v20  ;;  %v3995_v25 = vadd.f32 %v2059_v23, %v1934_v17  ;;  %v2061_v27 = vpop.f32.mrb[31].mxu0 }
 0xa0c   : > { %v3998_v43 = vmul.f32 0.70710677, %v3990_v22  ;;  %v4004_v59 = vadd.f32 %v2061_v27, %v1938_v18 }
 0xa0d   : > { %v2080_v57 = vand.u32 2147483647, %v3993_v24  ;;  %v4002_v56 = vmul.f32 0.70710677, %v3995_v25  ;;  %vm2072_vm3 = vcmp.ge.f32.partialorder %v3993_v24, 0.0 }
 0xa0e   : > { %v2081_v44 = vand.u32 2147483647, %v3998_v43  ;;  %v4009_v33 = vmul.f32 0.70710677, %v4004_v59  ;;  %vm2073_vm4 = vcmp.ge.f32.partialorder %v3998_v43, 0.0 }
 0xa0f   : > { %v2084_v29 = vmul.f32 0.3275911, %v2080_v57  ;;  %v2082_v31 = vand.u32 2147483647, %v4002_v56  ;;  %v2136_v40 = vsub.f32 0.0, %v2080_v57  ;;  %vm2074_vm5 = vcmp.ge.f32.partialorder %v4002_v56, 0.0 }
 0xa10   : > { %v2085_v30 = vmul.f32 0.3275911, %v2081_v44  ;;  %v2083_v36 = vand.u32 2147483647, %v4009_v33  ;;  %v2137_v41 = vsub.f32 0.0, %v2081_v44  ;;  %vm2075_vm6 = vcmp.ge.f32.partialorder %v4009_v33, 0.0 }
 0xa11   : > { %v2088_v32 = vadd.f32 1.0, %v2084_v29  ;;  %v2086_v35 = vmul.f32 0.3275911, %v2082_v31  ;;  %v2140_v42 = vmul.f32 %v2136_v40, %v2080_v57  ;;  %v2138_v45 = vsub.f32 0.0, %v2082_v31 }
 0xa12   : > { %v2089_v34 = vadd.f32 1.0, %v2085_v30  ;;  %v2087_v38 = vmul.f32 0.3275911, %v2083_v36  ;;  %v2141_v49 = vmul.f32 %v2137_v41, %v2081_v44  ;;  %v2139_v51 = vsub.f32 0.0, %v2083_v36 }
 0xa13   : > { %3213 = vrcp.f32 %v2088_v32  ;;  %v2090_v37 = vadd.f32 1.0, %v2086_v35  ;;  %v2144_v54 = vmul.f32 1.442695, %v2140_v42  ;;  %v2142_v58 = vmul.f32 %v2138_v45, %v2082_v31 }
 0xa14   : > { %3215 = vrcp.f32 %v2089_v34  ;;  %v2091_v39 = vadd.f32 1.0, %v2087_v38  ;;  %v2146_v61 = vmul.f32 1.442695, %v2141_v49  ;;  %v2143_v3 = vmul.f32 %v2139_v51, %v2083_v36 }
 0xa15   : > { %3217 = vrcp.f32 %v2090_v37  ;;  %v2148_v8 = vmul.f32 1.442695, %v2142_v58  ;;  %v3414_v45 = vmov -1.0   ;;  %v2066_v56 = vmul.f32 0.5, %v3995_v25  ;;  %v2796_v25 = vld [vmem:[%s790_s15] ss:$0 sm:$0xff] }
 0xa16   : > { %3219 = vrcp.f32 %v2091_v39  ;;  %v2150_v26 = vmul.f32 1.442695, %v2143_v3  ;;  %v2077_v24 = vsel %vm2073_vm4, 1.0, %v3414_v45  ;;  %v2078_v58 = vsel %vm2074_vm5, 1.0, %v3414_v45 }
 0xa17   : > { %3221 = vpow2.f32 %v2144_v54  ;;  %v2067_v33 = vmul.f32 0.5, %v4004_v59 }
 0xa18   : > { %3223 = vpow2.f32 %v2146_v61  ;;  %v2064_v61 = vmul.f32 0.5, %v3988_v20 }
 0xa19   : > { %3225 = vpow2.f32 %v2148_v8 }
 0xa1a   : > { %3227 = vpow2.f32 %v2150_v26 }
 0xa1d   : > { %v3214_v28 = vpop.eup %3213 }
 0xa1e   : > { %v3216_v47 = vpop.eup %3215  ;;  %v2100_v48 = vmul.f32 1.0614054, %v3214_v28 }
 0xa1f   : > { %v2101_v50 = vmul.f32 1.0614054, %v3216_v47  ;;  %v3218_v53 = vpop.eup %3217 }
 0xa20   : > { %v2788_v52 = vadd.f32 -1.4531521, %v2100_v48  ;;  %v2102_v62 = vmul.f32 1.0614054, %v3218_v53  ;;  %v3220_v1 = vpop.eup %3219  ;;  %v2076_v48 = vsel %vm2072_vm3, 1.0, %v3414_v45 }
 0xa21   : > { %v2789_v55 = vadd.f32 -1.4531521, %v2101_v50  ;;  %v2103_v6 = vmul.f32 1.0614054, %v3220_v1  ;;  %v3222_v31 = vpop.eup %3221 }
 0xa22   : > { %v2108_v60 = vmul.f32 %v3214_v28, %v2788_v52  ;;  %v2790_v5 = vadd.f32 -1.4531521, %v2102_v62  ;;  %v3224_v34 = vpop.eup %3223  ;;  %v2079_v62 = vsel %vm2075_vm6, 1.0, %v3414_v45 }
 0xa23   : > { %v2109_v2 = vmul.f32 %v3216_v47, %v2789_v55  ;;  %v2791_v10 = vadd.f32 -1.4531521, %v2103_v6  ;;  %v3226_v42 = vpop.eup %3225 }
 0xa24   : > { %v2112_v4 = vadd.f32 1.4214138, %v2108_v60  ;;  %v2110_v9 = vmul.f32 %v3218_v53, %v2790_v5  ;;  %v3228_v51 = vpop.eup %3227 }
 0xa25   : > { %v2113_v7 = vadd.f32 1.4214138, %v2109_v2  ;;  %v2111_v14 = vmul.f32 %v3220_v1, %v2791_v10 }
 0xa26   : > { %v2116_v46 = vmul.f32 %v3214_v28, %v2112_v4  ;;  %v2114_v13 = vadd.f32 1.4214138, %v2110_v9  ;;  %v2065_v4 = vmul.f32 0.5, %v3990_v22 }
 0xa27   : > { %v2117_v11 = vmul.f32 %v3216_v47, %v2113_v7  ;;  %v2115_v18 = vadd.f32 1.4214138, %v2111_v14 }
 0xa28   : > { %v2792_v12 = vadd.f32 -0.28449672, %v2116_v46  ;;  %v2118_v17 = vmul.f32 %v3218_v53, %v2114_v13 }
 0xa29   : > { %v2793_v15 = vadd.f32 -0.28449672, %v2117_v11  ;;  %v2119_v27 = vmul.f32 %v3220_v1, %v2115_v18 }
 0xa2a   : > { %v2124_v16 = vmul.f32 %v3214_v28, %v2792_v12  ;;  %v2794_v23 = vadd.f32 -0.28449672, %v2118_v17 }
 0xa2b   : > { %v2125_v19 = vmul.f32 %v3216_v47, %v2793_v15  ;;  %v2795_v30 = vadd.f32 -0.28449672, %v2119_v27 }
 0xa2c   : > { %v2128_v21 = vadd.f32 0.2548296, %v2124_v16  ;;  %v2126_v29 = vmul.f32 %v3218_v53, %v2794_v23 }
 0xa2d   : > { %v2129_v57 = vadd.f32 0.2548296, %v2125_v19  ;;  %v2127_v37 = vmul.f32 %v3220_v1, %v2795_v30 }
 0xa2e   : > { %v2132_v44 = vmul.f32 %v3214_v28, %v2128_v21  ;;  %v2130_v36 = vadd.f32 0.2548296, %v2126_v29 }
 0xa2f   : > { %v2133_v32 = vmul.f32 %v3216_v47, %v2129_v57  ;;  %v2131_v41 = vadd.f32 0.2548296, %v2127_v37 }
 0xa30   : > { %v2152_v35 = vmul.f32 %v3222_v31, %v2132_v44  ;;  %v2134_v40 = vmul.f32 %v3218_v53, %v2130_v36 }
 0xa31   : > { %v2153_v38 = vmul.f32 %v3224_v34, %v2133_v32  ;;  %v2135_v50 = vmul.f32 %v3220_v1, %v2131_v41 }
 0xa32   : > { %v2156_v39 = vsub.f32 1.0, %v2152_v35  ;;  %v2154_v47 = vmul.f32 %v3226_v42, %v2134_v40  ;;  %v2813_v35 = vld [vmem:[%s793_s30] ss:$0 sm:$0xff]  ;;  %s4166_s30 = sld [smem:[#allocation25_spill]] (!%p2815_p7) }
 0xa33   : > { %v2157_v28 = vsub.f32 1.0, %v2153_v38  ;;  %v2155_v55 = vmul.f32 %v3228_v51, %v2135_v50  ;;  %v2814_v38 = vld [vmem:[%s796_s6] ss:$0 sm:$0xff] }
 0xa34   : > { %v2160_v49 = vmul.f32 %v2156_v39, %v2076_v48  ;;  %v2158_v54 = vsub.f32 1.0, %v2154_v47 }
 0xa35   : > { %v2161_v52 = vmul.f32 %v2157_v28, %v2077_v24  ;;  %v2159_v60 = vsub.f32 1.0, %v2155_v55  ;;  %v3415_v28 = vmov (!%p2815_p7), 0.0  }
 0xa36   : > { %v2164_v43 = vadd.f32 1.0, %v2160_v49  ;;  %v2162_v53 = vmul.f32 %v2158_v54, %v2078_v58  ;;  %3000 = vmatprep.subr.bf16.mxu0 (!%p2815_p7), %v3415_v28  ;;  %3016 = vmatprep.mubr.msk.bf16.mxu0 (!%p2815_p7), %vm3416_vm7, %v3415_v28 }
 0xa37   : > { %v2165_v2 = vadd.f32 1.0, %v2161_v52  ;;  %v2163_v1 = vmul.f32 %v2159_v60, %v2079_v62 }
 0xa38   : > { %v2166_v3 = vadd.f32 1.0, %v2162_v53  ;;  %v2168_v5 = vmul.f32 %v2164_v43, %v2064_v61  ;;  %s4167_s3 = smov (!%p2815_p7), %s4166_s30  ;;  %v3233_v48 = vld [vmem:[%s4166_s30] sm:$0xff] (!%p2815_p7)  }
 0xa39   : > { %v2167_v7 = vadd.f32 1.0, %v2163_v1  ;;  %v2169_v8 = vmul.f32 %v2165_v2, %v2065_v4  ;;  %3001 = vmatpush3.bf16.msra.mxu0 (!%p2815_p7), %v3233_v48  ;;  %v3234_v49 = vld [vmem:[%s4167_s3 + $0x8] sm:$0xff] (!%p2815_p7)   ;;  %v3235_v47 = vld [vmem:[%s4167_s3 + $0x10] sm:$0xff] (!%p2815_p7)   ;;  %v3236_v50 = vld [vmem:[%s4167_s3 + $0x18] sm:$0xff] (!%p2815_p7)  }
 0xa3a   : > { %v2170_v6 = vmul.f32 %v2166_v3, %v2066_v56  ;;  %3002 = vmatprep.subr.bf16.mxu0 (!%p2815_p7), %v3415_v28  ;;  %v3237_v51 = vld [vmem:[%s4167_s3 + $0x20] sm:$0xff] (!%p2815_p7)   ;;  %v3238_v24 = vld [vmem:[%s4167_s3 + $0x28] sm:$0xff] (!%p2815_p7)   ;;  %v3239_v52 = vld [vmem:[%s4167_s3 + $0x30] sm:$0xff] (!%p2815_p7)  }
 0xa3b   : > { %v2171_v9 = vmul.f32 %v2167_v7, %v2067_v33  ;;  %v3240_v55 = vld [vmem:[%s4167_s3 + $0x38] sm:$0xff] (!%p2815_p7)   ;;  %v2816_v53 = vld [vmem:[%s4168_s24] ss:$0 sm:$0xff] (!%p2815_p7) }
 0xa3c   : > { %v2172_v46 = vpack.c.bf16 %v2170_v6, %v2168_v5 }
 0xa3d   : > { %v2173_v10 = vpack.c.bf16 %v2171_v9, %v2169_v8  ;;  %3003 = vmatpush3.bf16.msra.mxu0 (!%p2815_p7), %v3234_v49 }
 0xa3e   : > { %3004 = vmatprep.subr.bf16.mxu0 (!%p2815_p7), %v3415_v28 }
 0xa3f   : > { %2341 = vmatprep.mubr.bf16.mxu1 %v2173_v10 }
 0xa40   : > { %2342 = vmatmul.mubr.bf16.vlgmr.msra.gmra.mrb[28].mxu1 %v2172_v46 }
 0xa41   : > { %3005 = vmatpush3.bf16.msra.mxu0 (!%p2815_p7), %v3235_v47 }
 0xa42   : > { %3006 = vmatprep.subr.bf16.mxu0 (!%p2815_p7), %v3415_v28 }
 0xa45   : > { %3007 = vmatpush3.bf16.msra.mxu0 (!%p2815_p7), %v3236_v50 }
 0xa46   : > { %3008 = vmatprep.subr.bf16.mxu0 (!%p2815_p7), %v3415_v28 }
 0xa49   : > { %3009 = vmatpush3.bf16.msra.mxu0 (!%p2815_p7), %v3237_v51 }
 0xa4a   : > { %3010 = vmatprep.subr.bf16.mxu0 (!%p2815_p7), %v3415_v28 }
 0xa4d   : > { %3011 = vmatpush3.bf16.msra.mxu0 (!%p2815_p7), %v3238_v24 }
 0xa4e   : > { %3012 = vmatprep.subr.bf16.mxu0 (!%p2815_p7), %v3415_v28 }
 0xa51   : > { %3013 = vmatpush3.bf16.msra.mxu0 (!%p2815_p7), %v3239_v52 }
 0xa52   : > { %3014 = vmatprep.subr.bf16.mxu0 (!%p2815_p7), %v3415_v28 }
 0xa55   : > { %3015 = vmatpush3.bf16.msra.mxu0 (!%p2815_p7), %v3240_v55 }
 0xb13   : > { %v2885_v20 = vpop.f32.mrb[28].mxu1 }
 0xb14   : > { %v2886_v11 = vpop.f32.mrb[29].mxu1 }
 0xb15   : > { %v2887_v26 = vadd.f32 %v2886_v11, %v2885_v20  ;;  %v2888_v22 = vpop.f32.mrb[30].mxu1 }
 0xb16   : > { %v2889_v12 = vpop.f32.mrb[31].mxu1 }
 0xb17   : > { %v2344_v13 = vadd.f32 %v2887_v26, %v2796_v25  ;;  %v2890_v14 = vadd.f32 %v2889_v12, %v2888_v22 }
 0xb19   : > { %v2347_v59 = vadd.f32 %v2890_v14, %v2796_v25  ;;  %v2350_v15 = vadd.f32 %v2344_v13, %v3961_v63 }
 0xb1b   : > { %2354 = vadd.xlane.f32.xlu1 %v2350_v15  ;;  %v2351_v16 = vadd.f32 %v2347_v59, %v3963_v0 }
 0xb1d   : > { %2356 = vadd.xlane.f32.xlu0 %v2351_v16 }
 0xba8   : > { %v2355_v17 = vpop.xlane.xlu1 %2354 }
 0xba9   : > { %v2358_v18 = vmul.f32 0.0078125, %v2355_v17 }
 0xbaa   : > { %v2357_v19 = vpop.xlane.xlu0 %2356 }
 0xbab   : > { %v2360_v21 = vsub.f32 %v2350_v15, %v2358_v18  ;;  %v2359_v23 = vmul.f32 0.0078125, %v2357_v19 }
 0xbad   : > { %v2361_v27 = vsub.f32 %v2351_v16, %v2359_v23  ;;  %v2362_v57 = vmul.f32 %v2360_v21, %v2360_v21 }
 0xbaf   : > { %2364 = vadd.xlane.f32.xlu1 %v2362_v57  ;;  %v2363_v44 = vmul.f32 %v2361_v27, %v2361_v27 }
 0xbb1   : > { %2366 = vadd.xlane.f32.xlu0 %v2363_v44 }
 0xc3c   : > { %v2365_v29 = vpop.xlane.xlu1 %2364 }
 0xc3d   : > { %v2368_v30 = vmul.f32 0.0078125, %v2365_v29 }
 0xc3e   : > { %v2367_v31 = vpop.xlane.xlu0 %2366 }
 0xc3f   : > { %v2370_v63 = vadd.f32 1e-12, %v2368_v30  ;;  %v2369_v32 = vmul.f32 0.0078125, %v2367_v31 }
 0xc41   : > { %3229 = vrsqrt.f32 %v2370_v63  ;;  %v2371_v0 = vadd.f32 1e-12, %v2369_v32 }
 0xc43   : > { %3231 = vrsqrt.f32 %v2371_v0 }
 0xc4b   : > { %v3230_v34 = vpop.eup %3229 }
 0xc4c   : > { %v2374_v36 = vmul.f32 %v3230_v34, %v2360_v21 }
 0xc4d   : > { %v3232_v37 = vpop.eup %3231 }
 0xc4e   : > { %v2382_v39 = vmul.f32 %v2813_v35, %v2374_v36  ;;  %v2375_v40 = vmul.f32 %v3232_v37, %v2361_v27  ;;  %2397 = sbr.rel (%p2815_p7) target bundleno = 3376 (0xd30), region = 112 }
 0xc50   : > { %v2390_v41 = vadd.f32 %v2814_v38, %v2382_v39  ;;  %v2383_v42 = vmul.f32 %v2813_v35, %v2375_v40 }
 0xc52   : > { %2392 = vst [vmem:[#allocation2] sm:$0xff] %v2390_v41  ;;  %v2391_v45 = vadd.f32 %v2814_v38, %v2383_v42 }
 0xc54   : > { %2393 = vst [vmem:[#allocation2 + $0x8] sm:$0xff] %v2391_v45  ;;  %v2399_v54 = vrot.slane (!%p2815_p7), %v2391_v45, 7 }
 0xc56   : > { %v2402_v58 = vsel %vm2401_vm8, %v2390_v41, %v2399_v54 }
 0xc57   : > { %v2403_v43 = vpack.c.bf16 %v2402_v58, %v2402_v58 }
 0xc59   : > { %3017 = vmatmul.mubr.bf16.vlgmr.msra.gmra.mrb[0].mxu0 %v2403_v43 }
 0xd2c   : > { %v2509_v60 = vpop.f32.mrb[0].mxu0 }
 0xd2d   : > { %v2510_v61 = vadd.f32 %v2816_v53, %v2509_v60  ;;  %v3018_v62 = vpop.f32.mrb[1].mxu0 }
 0xd2e   : > { %v2512_v2 = vpop.f32.mrb[2].mxu0 }
 0xd2f   : > { %2515 = vst [vmem:[#allocation9] sm:$0x3] %v2510_v61  ;;  %v3019_v56 = vpop.f32.mrb[3].mxu0 }
 0xd30 PF: > { %p3045_p12 = scmp.eq.s32.totalorder %s3532_s0, 1  ;;  %s3417_s29 = smov [#allocation9]  }
 0xd31   : > { %s2523_s30 = sshll.u32 %s3417_s29, 4  ;;  %s2524_s30 = int_to_ptr.vmem [resolvable:$true] %s2523_s30 }
 0xd32   : > { %s3331_s21 = scalar_lea.vmem %s2524_s30, 32  ;;  %p3338_p6 = scmp.lt.s32.totalorder %s2524_s30, %s2524_s30 }
 0xd33   : > { %p3332_p2 = scmp.ne.s32.totalorder %s2524_s30, %s3331_s21  ;;  %p3339_p1 = scmp.lt.s32.totalorder %s3331_s21, %s3331_s21 }
 0xd35   : > { %p3333_p3 = pnand %p3332_p2, %p3045_p12  ;;  %p3340_p4 = por %p3339_p1, %p3338_p6 }
 0xd37   : > { %p3334_p5 = pneg %p3333_p3 }
 0xd39   : > { %p3341_p11 = pnand %p3340_p4, %p3334_p5 }
 0xd3b   : > { %3344 = shalt.err (!%p3341_p11)
}
 0xd3c   : > { %s4169_s18 = sld [smem:[#allocation27_spill]] }
 0xd42   : > { %s3345_s27 = scalar_lea.hbm %s4169_s18, 32 }
 0xd43   : > { %p3346_p13 = scmp.ne.s32.totalorder %s4169_s18, %s3345_s27  ;;  %p3351_p8 = scmp.lt.u32.totalorder %s3345_s27, %s4169_s18 }
 0xd45   : > { %p3347_p10 = pnand %p3346_p13, %p3045_p12 }
 0xd47   : > { %p3348_p9 = pneg %p3347_p10 }
 0xd49   : > { %p3353_p0 = pnand %p3351_p8, %p3348_p9 }
 0xd4b   : > { %3356 = shalt.err (!%p3353_p0)
}
 0xd4c   : > { %3031 = dma.vmem_to_hbm [thread:$0]  (%p3045_p12), %s2524_s30, 32, %s4169_s18, [#allocation5]  }
 0xd4d   : > { %3382 = dma.done.wait (%p3045_p12), [#allocation5], 32  }
 0xd4e   : > { %3384 = vsyncadd (%p3045_p12), [#allocation5], 4294967264 }
 0xd4f PF: > { %s4170_s30 = sld [smem:[#allocation14_spill]]  ;;  %s4171_s15 = sld [smem:[#allocation13_spill]] }
 0xd50   : > { %s4172_s29 = sld [smem:[#allocation15_spill]]  ;;  %s4173_s27 = smov %s3391_s28 }
 0xd55   : > { %p32_p7 = scmp.ge.s32.totalorder %s4170_s30, 4   ;;  %s4174_s28 = smov %s4171_s15 }
 0xd57   :  { %34 = sbr.rel (!%p32_p7) target bundleno = 19 (0x13), region = 188 }
 0xd5e   :  { %2536 = vsyncpa [#allocation4], 1 }
 0xd5f   :  { %2538 = vsyncpa [#allocation4 + $0x1], 1 }
 0xd60   :  { %2539 = vsyncpa [#allocation7], 1 }
 0xd61   :  { %2541 = vsyncpa [#allocation7 + $0x1], 1 }
 0xd62   :  { %2542 = vsyncpa [#allocation5], 1 }
 0xd63   :  { %2544 = vsyncpa [#allocation5 + $0x1], 1 }

</bundles_post_ra>
